<compile_context>
chip_gen: v7x
topology: tpu7x:2x2x1
jax: 0.10.0
libtpu: 0.0.40
codegen_flags: <defaults>
</compile_context>

<pallas_src>
import jax
import jax.numpy as jnp
from jax import lax
from jax.experimental import pallas as pl
from jax.experimental.pallas import tpu as pltpu

# ---- static hyper-parameters (mirror MonteCarlo.__init__; small max_iter for demo) ----
MAX_ITER = 100
BURNIN_RATIO = 0.2
THINNING = 10
CLIP = (-1.0, 2.0)
BURNIN_ITER = int(BURNIN_RATIO * MAX_ITER)

STEP_SIZE = 0.01       # ULA step size
ALPHA = 1.0            # prior weight
SIGMA_NOISE = 1.0      # likelihood noise std (L2 data fidelity)
SIGMA_DENOISER = 1.0   # ScorePrior denoiser std


def monte_carlo_kernel(x0_ref, m_ref, noise_ref,
                       mean_ref, var_ref,
                       x_sc, mean_sc, s_sc, k_sc):
    """One grid step = one THINNING-chunk of the Markov chain."""
    g = pl.program_id(0)

    # ---- chain / Welford init (reference: Welford(g_statistic(A_adjoint(y))), k = 1) ----
    @pl.when(g == 0)
    def _init():
        x0 = x0_ref[...]
        x_sc[...] = x0
        mean_sc[...] = x0
        s_sc[...] = jnp.zeros_like(s_sc)
        k_sc[0] = jnp.int32(1)

    m_bf16 = m_ref[...]  # (N, N) bf16, single resident VMEM copy

    def langevin_step(x, drift_noise):
        # x <- clip(x @ M + b + sqrt(2*dt)*n); drift b is pre-folded into drift_noise.
        # bf16 MXU pass with f32 accumulation (review: biggest single win on this
        # latency-bound serial chain); add/clip stay in f32.
        x_new = jnp.dot(x.astype(jnp.bfloat16), m_bf16,
                        preferred_element_type=jnp.float32) + drift_noise
        return jnp.clip(x_new, CLIP[0], CLIP[1])

    # First step of this chunk is reference iteration it = g*THINNING, the only Welford
    # candidate in the chunk (reference predicate: it >= burnin_iter and it % thinning == 0;
    # it % thinning == 0 holds by construction).
    x = langevin_step(x_sc[...], noise_ref[0])

    @pl.when(g * THINNING >= BURNIN_ITER)
    def _welford():
        k_new = k_sc[0] + 1
        k_sc[0] = k_new
        inv_k = 1.0 / k_new.astype(jnp.float32)      # scalar reciprocal, not vector divide
        delta = x - mean_sc[...]
        mean_new = mean_sc[...] + delta * inv_k
        s_sc[...] = s_sc[...] + delta * (x - mean_new)
        mean_sc[...] = mean_new

    # Remaining THINNING-1 pure Langevin steps: carry is x only (no statistics work).
    def inner(j, xc):
        return langevin_step(xc, noise_ref[j])

    x = lax.fori_loop(1, THINNING, inner, x, unroll=True)
    x_sc[...] = x

    # ---- finalize: posterior mean and unbiased variance S / (k - 1) ----
    @pl.when(g == pl.num_programs(0) - 1)
    def _finalize():
        mean_ref[...] = mean_sc[...]
        denom = jnp.maximum(k_sc[0] - 1, 1).astype(jnp.float32)
        var_ref[...] = s_sc[...] / denom
    # TODO(synk): check_conv-based mean/var convergence flags and save_chain are module
    # side state, not part of forward()'s return; omitted from the kernel output.


def monte_carlo(y_nchw, A, D, seed=0):
    B, C, H, W = y_nchw.shape
    R, N = B * C, H * W
    assert MAX_ITER % THINNING == 0, "demo assumes max_iter divisible by thinning"
    n_chunks = MAX_ITER // THINNING

    y_flat = y_nchw.reshape(R, N).astype(jnp.float32)

    inv_sigma2 = 1.0 / (SIGMA_NOISE * SIGMA_NOISE)
    inv_sigmad2 = 1.0 / (SIGMA_DENOISER * SIGMA_DENOISER)

    # ---- precompute the affine Langevin update (single matmul per chain step) ----
    eye = jnp.eye(N, dtype=jnp.float32)
    M = eye - STEP_SIZE * (inv_sigma2 * (A @ A.T) + ALPHA * inv_sigmad2 * (eye - D))
    # bf16 storage for the MXU (single-pass matmul, half the VMEM); accumulation stays f32.
    M = M.astype(jnp.bfloat16)

    x0 = (y_flat @ A.T).astype(jnp.float32)        # physics.A_adjoint(y)
    b = (STEP_SIZE * inv_sigma2) * x0              # constant data-fidelity drift term

    # ---- pre-generate Langevin noise from the seed, pre-scaled by sqrt(2*dt) and with
    #      the constant drift b folded in (review: drop b as a kernel input) ----
    key = jax.random.PRNGKey(seed)
    noise = jnp.sqrt(jnp.float32(2.0 * STEP_SIZE)) * jax.random.normal(
        key, (MAX_ITER, R, N), dtype=jnp.float32)
    noise = noise + b[None, :, :]

    grid_spec = pltpu.PrefetchScalarGridSpec(
        num_scalar_prefetch=0,
        grid=(n_chunks,),
        in_specs=[
            # Loop-invariant inputs: whole-array, single resident VMEM copy (no double
            # buffering, unlike a blocked spec with a constant index_map).
            pl.BlockSpec(memory_space=pltpu.MemorySpace.VMEM),     # x0 (f32, resident)
            pl.BlockSpec(memory_space=pltpu.MemorySpace.VMEM),     # M  (bf16, resident)
            # Streamed noise chunk: default 2-deep pipelining hides the DMA.
            pl.BlockSpec((THINNING, R, N), lambda g: (g, 0, 0)),   # noise+drift chunk
        ],
        out_specs=[
            pl.BlockSpec((R, N), lambda g: (0, 0)),                # posterior mean
            pl.BlockSpec((R, N), lambda g: (0, 0)),                # posterior var
        ],
        scratch_shapes=[
            pltpu.VMEM((R, N), jnp.float32),   # x  (chain state)
            pltpu.VMEM((R, N), jnp.float32),   # running mean
            pltpu.VMEM((R, N), jnp.float32),   # running S
            pltpu.SMEM((1,), jnp.int32),       # Welford sample count k
        ],
    )

    # Explicit scoped-VMEM budget so the resident-M layout survives the different
    # per-generation defaults (v5e 16 MiB / v6e 32 MiB / v7x 32 MiB-of-64 MiB).
    vmem_needed = (N * N * 2                       # M (bf16, single copy)
                   + R * N * 4                     # x0
                   + 2 * THINNING * R * N * 4      # noise chunk, double-buffered
                   + 2 * 2 * R * N * 4             # two outputs, double-buffered
                   + 3 * R * N * 4)                # VMEM scratch
    vmem_limit_bytes = int(min(max(vmem_needed + (8 << 20), 32 << 20), 64 << 20))

    cost = pl.CostEstimate(
        flops=2 * MAX_ITER * R * N * N,
        transcendentals=0,
        bytes_accessed=4 * MAX_ITER * R * N + 2 * N * N + 4 * 4 * R * N,
    )

    mean, var = pl.pallas_call(
        monte_carlo_kernel,
        grid_spec=grid_spec,
        out_shape=(
            jax.ShapeDtypeStruct((R, N), jnp.float32),
            jax.ShapeDtypeStruct((R, N), jnp.float32),
        ),
        # Markov chain is strictly sequential -> "arbitrary"; batching independent chains
        # (larger R / a leading parallel axis) is the only way to use a second TensorCore.
        compiler_params=pltpu.CompilerParams(
            dimension_semantics=("arbitrary",),
            vmem_limit_bytes=vmem_limit_bytes,
        ),
        cost_estimate=cost,
    )(x0, M, noise)

    return mean.reshape(B, C, H, W), var.reshape(B, C, H, W)


if __name__ == "__main__":
    B, C, H, W = 2, 4, 16, 16
    N = H * W

    key = jax.random.PRNGKey(0)
    k_y, k_a = jax.random.split(key)

    # measurements y (NCHW)
    y = jax.random.normal(k_y, (B, C, H, W), dtype=jnp.float32)

    # deterministic synthetic physics: A = I + 0.05 * noise  (well conditioned)
    A = jnp.eye(N, dtype=jnp.float32) + 0.05 * jax.random.normal(k_a, (N, N), dtype=jnp.float32)

    # deterministic linear "denoiser" D of the score prior: row-normalized exponential smoothing
    idx = jnp.arange(N, dtype=jnp.float32)
    D = jnp.exp(-jnp.abs(idx[:, None] - idx[None, :]) / 4.0)
    D = (D / jnp.sum(D, axis=1, keepdims=True)).astype(jnp.float32)

    mean, var = monte_carlo(y, A, D, seed=0)
    jax.block_until_ready((mean, var))

    assert mean.shape == (B, C, H, W) and var.shape == (B, C, H, W)
    assert bool(jnp.all(jnp.isfinite(mean))) and bool(jnp.all(jnp.isfinite(var)))
    print("KERNEL_OK")
</pallas_src>

<mosaic_0001>
module attributes {stable_mosaic.version = 11 : i64} {
  func.func @monte_carlo_kernel(%arg0: i32, %arg1: memref<8x256xf32, #tpu.memory_space<vmem>>, %arg2: memref<256x256xbf16, #tpu.memory_space<vmem>>, %arg3: memref<10x8x256xf32, #tpu.memory_space<vmem>>, %arg4: memref<8x256xf32, #tpu.memory_space<vmem>>, %arg5: memref<8x256xf32, #tpu.memory_space<vmem>>, %arg6: memref<8x256xf32, #tpu.memory_space<vmem>>, %arg7: memref<8x256xf32, #tpu.memory_space<vmem>>, %arg8: memref<8x256xf32, #tpu.memory_space<vmem>>, %arg9: memref<1xi32, #tpu.memory_space<smem>>) attributes {dimension_semantics = [#tpu.dimension_semantics<arbitrary>], iteration_bounds = array<i64: 10>, scalar_prefetch = 0 : i64, scratch_operands = 4 : i64, tpu.core_type = #tpu.core_type<tc>, window_params = [{pipeline_mode = #tpu.pipeline_mode<synchronous>, transform_indices = @transform_0, window_bounds = array<i64: 8, 256>}, {pipeline_mode = #tpu.pipeline_mode<synchronous>, transform_indices = @transform_1, window_bounds = array<i64: 256, 256>}, {transform_indices = @transform_2, window_bounds = array<i64: 10, 8, 256>}, {pipeline_mode = #tpu.pipeline_mode<synchronous>, transform_indices = @transform_3, window_bounds = array<i64: 8, 256>}, {pipeline_mode = #tpu.pipeline_mode<synchronous>, transform_indices = @transform_4, window_bounds = array<i64: 8, 256>}]} {
    %c0_i32 = arith.constant 0 : i32
    %0 = arith.cmpi eq, %arg0, %c0_i32 : i32
    %1 = arith.extui %0 : i1 to i32
    %c0_i32_0 = arith.constant 0 : i32
    %2 = arith.cmpi ne, %1, %c0_i32_0 : i32
    scf.if %2 {
      %c0_60 = arith.constant 0 : index
      %c0_61 = arith.constant 0 : index
      %112 = vector.load %arg1[%c0_60, %c0_61] : memref<8x256xf32, #tpu.memory_space<vmem>>, vector<8x256xf32>
      %c0_62 = arith.constant 0 : index
      %c0_63 = arith.constant 0 : index
      %113 = vector.load %arg6[%c0_62, %c0_63] : memref<8x256xf32, #tpu.memory_space<vmem>>, vector<8x256xf32>
      tpu.vector_store %arg6[%c0_62, %c0_63], %112 {strides = array<i32>} : memref<8x256xf32, #tpu.memory_space<vmem>>, vector<8x256xf32>,
      %c0_64 = arith.constant 0 : index
      %c0_65 = arith.constant 0 : index
      %114 = vector.load %arg7[%c0_64, %c0_65] : memref<8x256xf32, #tpu.memory_space<vmem>>, vector<8x256xf32>
      tpu.vector_store %arg7[%c0_64, %c0_65], %112 {strides = array<i32>} : memref<8x256xf32, #tpu.memory_space<vmem>>, vector<8x256xf32>,
      %cst_66 = arith.constant 0.000000e+00 : f32
      %115 = vector.broadcast %cst_66 : f32 to vector<8x256xf32>
      %c0_67 = arith.constant 0 : index
      %c0_68 = arith.constant 0 : index
      %116 = vector.load %arg8[%c0_67, %c0_68] : memref<8x256xf32, #tpu.memory_space<vmem>>, vector<8x256xf32>
      tpu.vector_store %arg8[%c0_67, %c0_68], %115 {strides = array<i32>} : memref<8x256xf32, #tpu.memory_space<vmem>>, vector<8x256xf32>,
      %c1_i32_69 = arith.constant 1 : i32
      %c0_70 = arith.constant 0 : index
      %117 = memref.load %arg9[%c0_70] : memref<1xi32, #tpu.memory_space<smem>>
      memref.store %c1_i32_69, %arg9[%c0_70] : memref<1xi32, #tpu.memory_space<smem>>
    } else {
    }
    %c0 = arith.constant 0 : index
    %c0_1 = arith.constant 0 : index
    %3 = vector.load %arg2[%c0, %c0_1] : memref<256x256xbf16, #tpu.memory_space<vmem>>, vector<256x256xbf16>
    %c0_2 = arith.constant 0 : index
    %c0_3 = arith.constant 0 : index
    %4 = vector.load %arg6[%c0_2, %c0_3] : memref<8x256xf32, #tpu.memory_space<vmem>>, vector<8x256xf32>
    %c0_4 = arith.constant 0 : index
    %c0_5 = arith.constant 0 : index
    %c0_6 = arith.constant 0 : index
    %5 = vector.load %arg3[%c0_4, %c0_5, %c0_6] : memref<10x8x256xf32, #tpu.memory_space<vmem>>, vector<1x8x256xf32>
    %6 = vector.shape_cast %5 : vector<1x8x256xf32> to vector<8x256xf32>
    %7 = arith.truncf %4 : vector<8x256xf32> to vector<8x256xbf16>
    %cst = arith.constant dense<0.000000e+00> : vector<8x256xf32>
    %8 = tpu.matmul %7, %3, %cst {dimension_numbers = #tpu.dot_dimension_numbers<[1], [0], [0], [1], [0, 0, 1, 1], [], []>} : vector<8x256xbf16>, vector<256x256xbf16>, vector<8x256xf32> -> vector<8x256xf32>
    %9 = arith.addf %8, %6 : vector<8x256xf32>
    %cst_7 = arith.constant -1.000000e+00 : f32
    %cst_8 = arith.constant 2.000000e+00 : f32
    %10 = vector.broadcast %cst_7 : f32 to vector<8x256xf32>
    %11 = arith.maximumf %10, %9 : vector<8x256xf32>
    %12 = vector.broadcast %cst_8 : f32 to vector<8x256xf32>
    %13 = arith.minimumf %12, %11 : vector<8x256xf32>
    %c10_i32 = arith.constant 10 : i32
    %14 = arith.muli %arg0, %c10_i32 : i32
    %c20_i32 = arith.constant 20 : i32
    %15 = arith.cmpi sge, %14, %c20_i32 : i32
    %16 = arith.extui %15 : i1 to i32
    %c0_i32_9 = arith.constant 0 : i32
    %17 = arith.cmpi ne, %16, %c0_i32_9 : i32
    scf.if %17 {
      %c0_60 = arith.constant 0 : index
      %112 = memref.load %arg9[%c0_60] : memref<1xi32, #tpu.memory_space<smem>>
      %c1_i32_61 = arith.constant 1 : i32
      %113 = arith.addi %112, %c1_i32_61 : i32
      %c0_62 = arith.constant 0 : index
      %114 = memref.load %arg9[%c0_62] : memref<1xi32, #tpu.memory_space<smem>>
      memref.store %113, %arg9[%c0_62] : memref<1xi32, #tpu.memory_space<smem>>
      %115 = arith.sitofp %113 : i32 to f32
      %cst_63 = arith.constant 1.000000e+00 : f32
      %116 = arith.divf %cst_63, %115 : f32
      %c0_64 = arith.constant 0 : index
      %c0_65 = arith.constant 0 : index
      %117 = vector.load %arg7[%c0_64, %c0_65] : memref<8x256xf32, #tpu.memory_space<vmem>>, vector<8x256xf32>
      %118 = arith.subf %13, %117 : vector<8x256xf32>
      %c0_66 = arith.constant 0 : index
      %c0_67 = arith.constant 0 : index
      %119 = vector.load %arg7[%c0_66, %c0_67] : memref<8x256xf32, #tpu.memory_space<vmem>>, vector<8x256xf32>
      %120 = vector.broadcast %116 : f32 to vector<8x256xf32>
      %121 = arith.mulf %118, %120 : vector<8x256xf32>
      %122 = arith.addf %119, %121 : vector<8x256xf32>
      %c0_68 = arith.constant 0 : index
      %c0_69 = arith.constant 0 : index
      %123 = vector.load %arg8[%c0_68, %c0_69] : memref<8x256xf32, #tpu.memory_space<vmem>>, vector<8x256xf32>
      %124 = arith.subf %13, %122 : vector<8x256xf32>
      %125 = arith.mulf %118, %124 : vector<8x256xf32>
      %126 = arith.addf %123, %125 : vector<8x256xf32>
      %c0_70 = arith.constant 0 : index
      %c0_71 = arith.constant 0 : index
      %127 = vector.load %arg8[%c0_70, %c0_71] : memref<8x256xf32, #tpu.memory_space<vmem>>, vector<8x256xf32>
      tpu.vector_store %arg8[%c0_70, %c0_71], %126 {strides = array<i32>} : memref<8x256xf32, #tpu.memory_space<vmem>>, vector<8x256xf32>,
      %c0_72 = arith.constant 0 : index
      %c0_73 = arith.constant 0 : index
      %128 = vector.load %arg7[%c0_72, %c0_73] : memref<8x256xf32, #tpu.memory_space<vmem>>, vector<8x256xf32>
      tpu.vector_store %arg7[%c0_72, %c0_73], %122 {strides = array<i32>} : memref<8x256xf32, #tpu.memory_space<vmem>>, vector<8x256xf32>,
    } else {
    }
    %c1_i32 = arith.constant 1 : i32
    %18 = arith.index_cast %c1_i32 : i32 to index
    %c0_10 = arith.constant 0 : index
    %c0_11 = arith.constant 0 : index
    %19 = vector.load %arg3[%18, %c0_10, %c0_11] : memref<10x8x256xf32, #tpu.memory_space<vmem>>, vector<1x8x256xf32>
    %20 = vector.shape_cast %19 : vector<1x8x256xf32> to vector<8x256xf32>
    %21 = arith.truncf %13 : vector<8x256xf32> to vector<8x256xbf16>
    %cst_12 = arith.constant dense<0.000000e+00> : vector<8x256xf32>
    %22 = tpu.matmul %21, %3, %cst_12 {dimension_numbers = #tpu.dot_dimension_numbers<[1], [0], [0], [1], [0, 0, 1, 1], [], []>} : vector<8x256xbf16>, vector<256x256xbf16>, vector<8x256xf32> -> vector<8x256xf32>
    %23 = arith.addf %22, %20 : vector<8x256xf32>
    %cst_13 = arith.constant -1.000000e+00 : f32
    %cst_14 = arith.constant 2.000000e+00 : f32
    %24 = vector.broadcast %cst_13 : f32 to vector<8x256xf32>
    %25 = arith.maximumf %24, %23 : vector<8x256xf32>
    %26 = vector.broadcast %cst_14 : f32 to vector<8x256xf32>
    %27 = arith.minimumf %26, %25 : vector<8x256xf32>
    %c2_i32 = arith.constant 2 : i32
    %28 = arith.index_cast %c2_i32 : i32 to index
    %c0_15 = arith.constant 0 : index
    %c0_16 = arith.constant 0 : index
    %29 = vector.load %arg3[%28, %c0_15, %c0_16] : memref<10x8x256xf32, #tpu.memory_space<vmem>>, vector<1x8x256xf32>
    %30 = vector.shape_cast %29 : vector<1x8x256xf32> to vector<8x256xf32>
    %31 = arith.truncf %27 : vector<8x256xf32> to vector<8x256xbf16>
    %cst_17 = arith.constant dense<0.000000e+00> : vector<8x256xf32>
    %32 = tpu.matmul %31, %3, %cst_17 {dimension_numbers = #tpu.dot_dimension_numbers<[1], [0], [0], [1], [0, 0, 1, 1], [], []>} : vector<8x256xbf16>, vector<256x256xbf16>, vector<8x256xf32> -> vector<8x256xf32>
    %33 = arith.addf %32, %30 : vector<8x256xf32>
    %cst_18 = arith.constant -1.000000e+00 : f32
    %cst_19 = arith.constant 2.000000e+00 : f32
    %34 = vector.broadcast %cst_18 : f32 to vector<8x256xf32>
    %35 = arith.maximumf %34, %33 : vector<8x256xf32>
    %36 = vector.broadcast %cst_19 : f32 to vector<8x256xf32>
    %37 = arith.minimumf %36, %35 : vector<8x256xf32>
    %c3_i32 = arith.constant 3 : i32
    %38 = arith.index_cast %c3_i32 : i32 to index
    %c0_20 = arith.constant 0 : index
    %c0_21 = arith.constant 0 : index
    %39 = vector.load %arg3[%38, %c0_20, %c0_21] : memref<10x8x256xf32, #tpu.memory_space<vmem>>, vector<1x8x256xf32>
    %40 = vector.shape_cast %39 : vector<1x8x256xf32> to vector<8x256xf32>
    %41 = arith.truncf %37 : vector<8x256xf32> to vector<8x256xbf16>
    %cst_22 = arith.constant dense<0.000000e+00> : vector<8x256xf32>
    %42 = tpu.matmul %41, %3, %cst_22 {dimension_numbers = #tpu.dot_dimension_numbers<[1], [0], [0], [1], [0, 0, 1, 1], [], []>} : vector<8x256xbf16>, vector<256x256xbf16>, vector<8x256xf32> -> vector<8x256xf32>
    %43 = arith.addf %42, %40 : vector<8x256xf32>
    %cst_23 = arith.constant -1.000000e+00 : f32
    %cst_24 = arith.constant 2.000000e+00 : f32
    %44 = vector.broadcast %cst_23 : f32 to vector<8x256xf32>
    %45 = arith.maximumf %44, %43 : vector<8x256xf32>
    %46 = vector.broadcast %cst_24 : f32 to vector<8x256xf32>
    %47 = arith.minimumf %46, %45 : vector<8x256xf32>
    %c4_i32 = arith.constant 4 : i32
    %48 = arith.index_cast %c4_i32 : i32 to index
    %c0_25 = arith.constant 0 : index
    %c0_26 = arith.constant 0 : index
    %49 = vector.load %arg3[%48, %c0_25, %c0_26] : memref<10x8x256xf32, #tpu.memory_space<vmem>>, vector<1x8x256xf32>
    %50 = vector.shape_cast %49 : vector<1x8x256xf32> to vector<8x256xf32>
    %51 = arith.truncf %47 : vector<8x256xf32> to vector<8x256xbf16>
    %cst_27 = arith.constant dense<0.000000e+00> : vector<8x256xf32>
    %52 = tpu.matmul %51, %3, %cst_27 {dimension_numbers = #tpu.dot_dimension_numbers<[1], [0], [0], [1], [0, 0, 1, 1], [], []>} : vector<8x256xbf16>, vector<256x256xbf16>, vector<8x256xf32> -> vector<8x256xf32>
    %53 = arith.addf %52, %50 : vector<8x256xf32>
    %cst_28 = arith.constant -1.000000e+00 : f32
    %cst_29 = arith.constant 2.000000e+00 : f32
    %54 = vector.broadcast %cst_28 : f32 to vector<8x256xf32>
    %55 = arith.maximumf %54, %53 : vector<8x256xf32>
    %56 = vector.broadcast %cst_29 : f32 to vector<8x256xf32>
    %57 = arith.minimumf %56, %55 : vector<8x256xf32>
    %c5_i32 = arith.constant 5 : i32
    %58 = arith.index_cast %c5_i32 : i32 to index
    %c0_30 = arith.constant 0 : index
    %c0_31 = arith.constant 0 : index
    %59 = vector.load %arg3[%58, %c0_30, %c0_31] : memref<10x8x256xf32, #tpu.memory_space<vmem>>, vector<1x8x256xf32>
    %60 = vector.shape_cast %59 : vector<1x8x256xf32> to vector<8x256xf32>
    %61 = arith.truncf %57 : vector<8x256xf32> to vector<8x256xbf16>
    %cst_32 = arith.constant dense<0.000000e+00> : vector<8x256xf32>
    %62 = tpu.matmul %61, %3, %cst_32 {dimension_numbers = #tpu.dot_dimension_numbers<[1], [0], [0], [1], [0, 0, 1, 1], [], []>} : vector<8x256xbf16>, vector<256x256xbf16>, vector<8x256xf32> -> vector<8x256xf32>
    %63 = arith.addf %62, %60 : vector<8x256xf32>
    %cst_33 = arith.constant -1.000000e+00 : f32
    %cst_34 = arith.constant 2.000000e+00 : f32
    %64 = vector.broadcast %cst_33 : f32 to vector<8x256xf32>
    %65 = arith.maximumf %64, %63 : vector<8x256xf32>
    %66 = vector.broadcast %cst_34 : f32 to vector<8x256xf32>
    %67 = arith.minimumf %66, %65 : vector<8x256xf32>
    %c6_i32 = arith.constant 6 : i32
    %68 = arith.index_cast %c6_i32 : i32 to index
    %c0_35 = arith.constant 0 : index
    %c0_36 = arith.constant 0 : index
    %69 = vector.load %arg3[%68, %c0_35, %c0_36] : memref<10x8x256xf32, #tpu.memory_space<vmem>>, vector<1x8x256xf32>
    %70 = vector.shape_cast %69 : vector<1x8x256xf32> to vector<8x256xf32>
    %71 = arith.truncf %67 : vector<8x256xf32> to vector<8x256xbf16>
    %cst_37 = arith.constant dense<0.000000e+00> : vector<8x256xf32>
    %72 = tpu.matmul %71, %3, %cst_37 {dimension_numbers = #tpu.dot_dimension_numbers<[1], [0], [0], [1], [0, 0, 1, 1], [], []>} : vector<8x256xbf16>, vector<256x256xbf16>, vector<8x256xf32> -> vector<8x256xf32>
    %73 = arith.addf %72, %70 : vector<8x256xf32>
    %cst_38 = arith.constant -1.000000e+00 : f32
    %cst_39 = arith.constant 2.000000e+00 : f32
    %74 = vector.broadcast %cst_38 : f32 to vector<8x256xf32>
    %75 = arith.maximumf %74, %73 : vector<8x256xf32>
    %76 = vector.broadcast %cst_39 : f32 to vector<8x256xf32>
    %77 = arith.minimumf %76, %75 : vector<8x256xf32>
    %c7_i32 = arith.constant 7 : i32
    %78 = arith.index_cast %c7_i32 : i32 to index
    %c0_40 = arith.constant 0 : index
    %c0_41 = arith.constant 0 : index
    %79 = vector.load %arg3[%78, %c0_40, %c0_41] : memref<10x8x256xf32, #tpu.memory_space<vmem>>, vector<1x8x256xf32>
    %80 = vector.shape_cast %79 : vector<1x8x256xf32> to vector<8x256xf32>
    %81 = arith.truncf %77 : vector<8x256xf32> to vector<8x256xbf16>
    %cst_42 = arith.constant dense<0.000000e+00> : vector<8x256xf32>
    %82 = tpu.matmul %81, %3, %cst_42 {dimension_numbers = #tpu.dot_dimension_numbers<[1], [0], [0], [1], [0, 0, 1, 1], [], []>} : vector<8x256xbf16>, vector<256x256xbf16>, vector<8x256xf32> -> vector<8x256xf32>
    %83 = arith.addf %82, %80 : vector<8x256xf32>
    %cst_43 = arith.constant -1.000000e+00 : f32
    %cst_44 = arith.constant 2.000000e+00 : f32
    %84 = vector.broadcast %cst_43 : f32 to vector<8x256xf32>
    %85 = arith.maximumf %84, %83 : vector<8x256xf32>
    %86 = vector.broadcast %cst_44 : f32 to vector<8x256xf32>
    %87 = arith.minimumf %86, %85 : vector<8x256xf32>
    %c8_i32 = arith.constant 8 : i32
    %88 = arith.index_cast %c8_i32 : i32 to index
    %c0_45 = arith.constant 0 : index
    %c0_46 = arith.constant 0 : index
    %89 = vector.load %arg3[%88, %c0_45, %c0_46] : memref<10x8x256xf32, #tpu.memory_space<vmem>>, vector<1x8x256xf32>
    %90 = vector.shape_cast %89 : vector<1x8x256xf32> to vector<8x256xf32>
    %91 = arith.truncf %87 : vector<8x256xf32> to vector<8x256xbf16>
    %cst_47 = arith.constant dense<0.000000e+00> : vector<8x256xf32>
    %92 = tpu.matmul %91, %3, %cst_47 {dimension_numbers = #tpu.dot_dimension_numbers<[1], [0], [0], [1], [0, 0, 1, 1], [], []>} : vector<8x256xbf16>, vector<256x256xbf16>, vector<8x256xf32> -> vector<8x256xf32>
    %93 = arith.addf %92, %90 : vector<8x256xf32>
    %cst_48 = arith.constant -1.000000e+00 : f32
    %cst_49 = arith.constant 2.000000e+00 : f32
    %94 = vector.broadcast %cst_48 : f32 to vector<8x256xf32>
    %95 = arith.maximumf %94, %93 : vector<8x256xf32>
    %96 = vector.broadcast %cst_49 : f32 to vector<8x256xf32>
    %97 = arith.minimumf %96, %95 : vector<8x256xf32>
    %c9_i32 = arith.constant 9 : i32
    %98 = arith.index_cast %c9_i32 : i32 to index
    %c0_50 = arith.constant 0 : index
    %c0_51 = arith.constant 0 : index
    %99 = vector.load %arg3[%98, %c0_50, %c0_51] : memref<10x8x256xf32, #tpu.memory_space<vmem>>, vector<1x8x256xf32>
    %100 = vector.shape_cast %99 : vector<1x8x256xf32> to vector<8x256xf32>
    %101 = arith.truncf %97 : vector<8x256xf32> to vector<8x256xbf16>
    %cst_52 = arith.constant dense<0.000000e+00> : vector<8x256xf32>
    %102 = tpu.matmul %101, %3, %cst_52 {dimension_numbers = #tpu.dot_dimension_numbers<[1], [0], [0], [1], [0, 0, 1, 1], [], []>} : vector<8x256xbf16>, vector<256x256xbf16>, vector<8x256xf32> -> vector<8x256xf32>
    %103 = arith.addf %102, %100 : vector<8x256xf32>
    %cst_53 = arith.constant -1.000000e+00 : f32
    %cst_54 = arith.constant 2.000000e+00 : f32
    %104 = vector.broadcast %cst_53 : f32 to vector<8x256xf32>
    %105 = arith.maximumf %104, %103 : vector<8x256xf32>
    %106 = vector.broadcast %cst_54 : f32 to vector<8x256xf32>
    %107 = arith.minimumf %106, %105 : vector<8x256xf32>
    %c9_i32_55 = arith.constant 9 : i32
    %c0_56 = arith.constant 0 : index
    %c0_57 = arith.constant 0 : index
    %108 = vector.load %arg6[%c0_56, %c0_57] : memref<8x256xf32, #tpu.memory_space<vmem>>, vector<8x256xf32>
    tpu.vector_store %arg6[%c0_56, %c0_57], %107 {strides = array<i32>} : memref<8x256xf32, #tpu.memory_space<vmem>>, vector<8x256xf32>,
    %c9_i32_58 = arith.constant 9 : i32
    %109 = arith.cmpi eq, %arg0, %c9_i32_58 : i32
    %110 = arith.extui %109 : i1 to i32
    %c0_i32_59 = arith.constant 0 : i32
    %111 = arith.cmpi ne, %110, %c0_i32_59 : i32
    scf.if %111 {
      %c0_60 = arith.constant 0 : index
      %c0_61 = arith.constant 0 : index
      %112 = vector.load %arg7[%c0_60, %c0_61] : memref<8x256xf32, #tpu.memory_space<vmem>>, vector<8x256xf32>
      %c0_62 = arith.constant 0 : index
      %c0_63 = arith.constant 0 : index
      %113 = vector.load %arg4[%c0_62, %c0_63] : memref<8x256xf32, #tpu.memory_space<vmem>>, vector<8x256xf32>
      tpu.vector_store %arg4[%c0_62, %c0_63], %112 {strides = array<i32>} : memref<8x256xf32, #tpu.memory_space<vmem>>, vector<8x256xf32>,
      %c0_64 = arith.constant 0 : index
      %114 = memref.load %arg9[%c0_64] : memref<1xi32, #tpu.memory_space<smem>>
      %c1_i32_65 = arith.constant 1 : i32
      %115 = arith.subi %114, %c1_i32_65 : i32
      %c1_i32_66 = arith.constant 1 : i32
      %116 = arith.maxsi %115, %c1_i32_66 : i32
      %117 = arith.sitofp %116 : i32 to f32
      %c0_67 = arith.constant 0 : index
      %c0_68 = arith.constant 0 : index
      %118 = vector.load %arg8[%c0_67, %c0_68] : memref<8x256xf32, #tpu.memory_space<vmem>>, vector<8x256xf32>
      %119 = vector.broadcast %117 : f32 to vector<8x256xf32>
      %120 = arith.divf %118, %119 : vector<8x256xf32>
      %c0_69 = arith.constant 0 : index
      %c0_70 = arith.constant 0 : index
      %121 = vector.load %arg5[%c0_69, %c0_70] : memref<8x256xf32, #tpu.memory_space<vmem>>, vector<8x256xf32>
      tpu.vector_store %arg5[%c0_69, %c0_70], %120 {strides = array<i32>} : memref<8x256xf32, #tpu.memory_space<vmem>>, vector<8x256xf32>,
    } else {
    }
    return
  }
  func.func @transform_0(%arg0: i32) -> (i32, i32) {
    %c0_i32 = arith.constant 0 : i32
    %c0_i32_0 = arith.constant 0 : i32
    %c0_i32_1 = arith.constant 0 : i32
    return %c0_i32, %c0_i32_0 : i32, i32
  }
  func.func @transform_1(%arg0: i32) -> (i32, i32) {
    %c0_i32 = arith.constant 0 : i32
    %c0_i32_0 = arith.constant 0 : i32
    %c0_i32_1 = arith.constant 0 : i32
    return %c0_i32, %c0_i32_0 : i32, i32
  }
  func.func @transform_2(%arg0: i32) -> (i32, i32, i32) {
    %c0_i32 = arith.constant 0 : i32
    %c0_i32_0 = arith.constant 0 : i32
    %c0_i32_1 = arith.constant 0 : i32
    return %arg0, %c0_i32, %c0_i32_0 : i32, i32, i32
  }
  func.func @transform_3(%arg0: i32) -> (i32, i32) {
    %c0_i32 = arith.constant 0 : i32
    %c0_i32_0 = arith.constant 0 : i32
    %c0_i32_1 = arith.constant 0 : i32
    return %c0_i32, %c0_i32_0 : i32, i32
  }
  func.func @transform_4(%arg0: i32) -> (i32, i32) {
    %c0_i32 = arith.constant 0 : i32
    %c0_i32_0 = arith.constant 0 : i32
    %c0_i32_1 = arith.constant 0 : i32
    return %c0_i32, %c0_i32_0 : i32, i32
  }
}

</mosaic_0001>

<bundles_post_ra>
// kernel: tpu_custom_call.1
= control target key start
LH: loop header
LB: loop body
LE: loop exit
PB: predicated region body
PF: predicated region fallthrough
CT: control target
= control target key end

     0   :  { %10 = vsyncpa [#allocation7], 0  ;;  %s2171_s0 = inlined_call_operand.hbm [shape: f32[8,256], index: 0, kind: input, shape index: {}]   ;;  %s2172_s1 = inlined_call_operand.hbm [shape: bf16[256,256], index: 1, kind: input, shape index: {}]   ;;  %s2173_s2 = inlined_call_operand.hbm [shape: f32[100,8,256], index: 2, kind: input, shape index: {}]   ;;  %s2174_s3 = inlined_call_operand.hbm [shape: f32[8,256], index: 3, kind: output, shape index: {0}]   ;;  %s2175_s4 = inlined_call_operand.hbm [shape: f32[8,256], index: 4, kind: output, shape index: {1}]  }
   0x1   :  { %11 = vsyncpa [#allocation10], 0 }
   0x2   :  { %12 = vsyncpa [#allocation8], 0 }
   0x3   :  { %13 = vsyncpa [#allocation14], 0  ;;  %s1527_s15 = smov 0   ;;  %s1529_s16 = smov 0  }
   0x4   :  { %s1531_s17 = smov 0   ;;  %s1533_s18 = smov 0  }
   0x5 LB: > { %s1546_s19 = sadd.s32 4294967295, %s1489_s18   ;;  %s1549_s20 = sadd.s32 1, %s1489_s18   ;;  %s1489_s18 = sphi %s1533_s18, %s2196_s18   ;;  %s1485_s17 = sphi %s1531_s17, %s2195_s17   ;;  %s1481_s16 = sphi %s1529_s16, %s2194_s16   ;;  %s1477_s15 = sphi %s1527_s15, %s2193_s15  }
   0x6   : > { %s65_s21 = ssub.s32 %s1489_s18, %s1549_s20  ;;  %s68_s22 = sadd.s32 1, %s1485_s17 }
   0x7   : > { %p66_p0 = scmp.eq.s32.totalorder %s65_s21, 0  ;;  %p75_p1 = scmp.ne.s32.totalorder %s1485_s17, %s1481_s16 }
   0x8   : > { %p76_p2 = scmp.eq.s32.totalorder %s1489_s18, 0  ;;  %p81_p3 = scmp.ne.s32.totalorder %s1481_s16, %s1477_s15 }
   0x9   : > { %s1559_s23 = scalar_select %p66_p0, %s1485_s17, %s68_s22  }
   0xa   : > { %p1561_p4 = por %p76_p2, %p75_p1  ;;  %p2176_p5 = scmp.eq.s32.totalorder %s1546_s19, 0 }
   0xb   : > { %p1093_p6 = scmp.ge.s32.totalorder %s1489_s18, 1  ;;  %p134_p7 = scmp.lt.s32.totalorder %s1489_s18, 11 }
   0xc   : > { %p1570_p8 = por %p2176_p5, %p81_p3  ;;  %s1491_s27 = smov [#allocation6]  }
   0xd   : > { %p1575_p10 = pnand %p1093_p6, %p134_p7  ;;  %s147_s28 = sshll.u32 %s1491_s27, 4  ;;  %s148_s28 = int_to_ptr.vmem [resolvable:$true] %s147_s28 }
   0xe   : > { %s2181_s25 = scalar_select %p1570_p8, 1, 0 }
   0xf   : > { %s2182_s26 = scalar_select %p1575_p10, 1, 0 }
  0x10   : > { %p1187_p11 = pneg %p1575_p10  ;;  %p1200_p12 = scmp.lt.s32.totalorder %s1489_s18, 10 }
  0x11   : > { %s1492_s30 = smov [#allocation9]   ;;  %s1301_s9 = scalar_lea.hbm %s2171_s0, 256 }
  0x12   : > { %p1584_p13 = pnand %p1187_p11, %p2176_p5  ;;  %s157_s5 = sshll.u32 %s1492_s30, 4  ;;  %s1594_s5 = int_to_ptr.vmem [resolvable:$true] %s157_s5 }
  0x13   : > { %p1590_p0 = pnand %p1200_p12, %p1561_p4  ;;  %p1302_p1 = scmp.ne.s32.totalorder %s2171_s0, %s1301_s9 }
  0x14   : > { %p1303_p2 = pneg %p1584_p13  ;;  %p1308_p4 = scmp.lt.u32.totalorder %s1301_s9, %s2171_s0 }
  0x15   : > { %s2184_s6 = scalar_select %p1590_p0, 1, 0 }
  0x16   : > { %p1304_p3 = pnand %p1303_p2, %p1302_p1 }
  0x18   : > { %p1305_p6 = pneg %p1304_p3 }
  0x1a   : > { %p1310_p7 = pnand %p1308_p4, %p1305_p6 }
  0x1c   : > { %1313 = shalt.err (!%p1310_p7)
}
  0x1d   : > { %s1314_s14 = scalar_lea.vmem %s148_s28, 256  ;;  %p1322_p5 = scmp.lt.s32.totalorder %s148_s28, %s148_s28 }
  0x1e   : > { %p1315_p11 = scmp.ne.s32.totalorder %s148_s28, %s1314_s14  ;;  %p1323_p8 = scmp.lt.s32.totalorder %s1314_s14, %s1314_s14 }
  0x20   : > { %p1317_p12 = pnand %p1315_p11, %p1303_p2  ;;  %p1324_p10 = por %p1323_p8, %p1322_p5 }
  0x22   : > { %p1318_p9 = pneg %p1317_p12 }
  0x24   : > { %p1325_p0 = pnand %p1324_p10, %p1318_p9 }
  0x26   : > { %1328 = shalt.err (!%p1325_p0)
}
  0x27   : > { %1190 = dma.hbm_to_vmem [thread:$0]  (!%p1584_p13), %s2171_s0, 256, %s148_s28, [#allocation7]  }
  0x28   : > { %s1329_s27 = scalar_lea.hbm %s2172_s1, 4096 }
  0x29   : > { %p1330_p1 = scmp.ne.s32.totalorder %s2172_s1, %s1329_s27  ;;  %p1336_p9 = scmp.lt.u32.totalorder %s1329_s27, %s2172_s1 }
  0x2b   : > { %p1332_p5 = pnand %p1330_p1, %p1303_p2 }
  0x2d   : > { %p1333_p8 = pneg %p1332_p5 }
  0x2f   : > { %p1338_p10 = pnand %p1336_p9, %p1333_p8 }
  0x31   : > { %1341 = shalt.err (!%p1338_p10)
}
  0x32   : > { %s1342_s28 = scalar_lea.vmem %s1594_s5, 4096  ;;  %p1350_p4 = scmp.lt.s32.totalorder %s1594_s5, %s1594_s5 }
  0x33   : > { %p1343_p0 = scmp.ne.s32.totalorder %s1594_s5, %s1342_s28  ;;  %p1351_p7 = scmp.lt.s32.totalorder %s1342_s28, %s1342_s28 }
  0x35   : > { %p1345_p3 = pnand %p1343_p0, %p1303_p2  ;;  %p1352_p11 = por %p1351_p7, %p1350_p4 }
  0x37   : > { %p1346_p6 = pneg %p1345_p3 }
  0x39   : > { %p1353_p12 = pnand %p1352_p11, %p1346_p6 }
  0x3b   : > { %1356 = shalt.err (!%p1353_p12)
}
  0x3c   : > { %s1493_s10 = smov 128   ;;  %s1494_s11 = smov 8  }
  0x3d   : > { %1193 = dma.hbm_to_vmem [thread:$0]  (!%p1584_p13), %s2172_s1, 4096, %s1594_s5, [#allocation10], %s1493_s10, %s1493_s10, %s1494_s11  }
  0x3e   : > { %s171_s14 = sand.u32 1, %s1489_s18   ;;  %s173_s15 = sand.u32 1, %s1485_s17  }
  0x3f   : > { %s1165_s21 = smul.u32 160, %s173_s15  ;;  %s1653_s29 = scalar_lea.sflag [#allocation7], %s171_s14 }
  0x40   : > { %s1164_s22 = smul.u32 2560, %s1489_s18  ;;  %p2185_p2 = scmp.ne.s32.totalorder %s2184_s6, 0 }
  0x41   : > { %s175_s7 = scalar_lea.vmem [#allocation11], %s1165_s21  ;;  %s1362_s28 = scalar_lea.hbm %s2173_s2, 25600 }
  0x42   : > { %s1649_s30 = scalar_lea.hbm %s2173_s2, %s1164_s22  ;;  %s183_s8 = sshll.u32 %s175_s7, 4  ;;  %s1651_s8 = int_to_ptr.vmem [resolvable:$true] %s183_s8 }
  0x43   : > { %s1357_s5 = scalar_lea.hbm %s1649_s30, 2560  ;;  %p1359_p1 = pneg %p2185_p2 }
  0x44   : > { %p1358_p13 = scmp.ne.s32.totalorder %s1649_s30, %s1357_s5  ;;  %p1363_p9 = scmp.lt.u32.totalorder %s1649_s30, %s2173_s2 }
  0x45   : > { %p1364_p10 = scmp.lt.u32.totalorder %s1362_s28, %s1357_s5  ;;  %p1366_p3 = scmp.lt.u32.totalorder %s1357_s5, %s1649_s30 }
  0x46   : > { %p1360_p5 = pnand %p1359_p1, %p1358_p13 }
  0x47   : > { %p1365_p0 = por %p1364_p10, %p1363_p9 }
  0x48   : > { %p1361_p8 = pneg %p1360_p5 }
  0x49   : > { %p1367_p6 = por %p1366_p3, %p1365_p0 }
  0x4b   : > { %p1368_p4 = pnand %p1367_p6, %p1361_p8 }
  0x4d   : > { %1371 = shalt.err (!%p1368_p4)
}
  0x4e   : > { %s1372_s12 = scalar_lea.vmem %s1651_s8, 2560  ;;  %s1495_s13 = smov [#allocation11]  }
  0x4f   : > { %p1373_p7 = scmp.ne.s32.totalorder %s1651_s8, %s1372_s12  ;;  %s1377_s14 = sshll.u32 %s1495_s13, 4  ;;  %s1378_s14 = int_to_ptr.vmem [resolvable:$false] %s1377_s14 }
  0x50   : > { %s1379_s15 = scalar_lea.vmem %s1378_s14, 5120  ;;  %p1380_p13 = scmp.lt.s32.totalorder %s1651_s8, %s1378_s14 }
  0x51   : > { %p1375_p11 = pnand %p1373_p7, %p1359_p1  ;;  %p1381_p5 = scmp.lt.s32.totalorder %s1379_s15, %s1372_s12 }
  0x53   : > { %p1376_p12 = pneg %p1375_p11  ;;  %p1382_p9 = por %p1381_p5, %p1380_p13 }
  0x55   : > { %p1383_p10 = pnand %p1382_p9, %p1376_p12 }
  0x57   : > { %1386 = shalt.err (!%p1383_p10)
}
  0x58   : > { %s1496_s21 = smov 256   ;;  %s1497_s22 = smov 16  }
  0x59   : > { %1197 = dma.hbm_to_vmem [thread:$0]  (!%p2185_p2), %s1649_s30, 2560, %s1651_s8, %s1653_s29, %s1496_s21, %s1496_s21, %s1497_s22  }
  0x5a   : > { %p2186_p1 = scmp.ne.s32.totalorder %s2182_s26, 0 }
  0x5b   : > { %p2187_p8 = scmp.eq.s32.totalorder (!%p2186_p1), %s1546_s19, 0 }
  0x5c   : > { %195 = sbr.rel (%p2186_p1) target bundleno = 2541 (0x9ed), region = 32 }
  0x63   : > { %1456 = dma.done.wait (%p2187_p8), [#allocation7], 256   ;;  %p2188_p0 = pmov %p2187_p8 }
  0x65   : > { %1458 = vsyncadd (%p2188_p0), [#allocation7], 4294967040  ;;  %p2189_p3 = pmov %p2188_p0 }
  0x66   : > { %p2190_p6 = pmov %p2188_p0 }
  0x67   : > { %1460 = dma.done.wait (%p2189_p3), [#allocation10], 4096  }
  0x68   : > { %1462 = vsyncadd (%p2190_p6), [#allocation10], 4294963200  ;;  %s205_s6 = sand.u32 1, %s1546_s19   ;;  %s207_s24 = sand.u32 1, %s1481_s16  }
  0x69   : > { %s1166_s27 = smul.u32 160, %s207_s24  ;;  %s206_s26 = scalar_lea.sflag [#allocation7], %s205_s6 }
  0x6a   : > { %p2191_p2 = scmp.ne.s32.totalorder %s2181_s25, 0 }
  0x6b   : > { %s1693_s30 = scalar_lea.vmem [#allocation11], %s1166_s27 }
  0x6c   : > { %1464 = dma.done.wait (%p2191_p2), %s206_s26, 2560  }
  0x6d   : > { %1466 = vsyncadd (%p2191_p2), %s206_s26, 4294964736  ;;  %p2192_p4 = scmp.ne.s32.totalorder %s1546_s19, 0 }
  0x6e   : > { %v234_v0 = vld [vmem:[#allocation6] sm:$0xff] (!%p2192_p4)  ;;  %v235_v1 = vld [vmem:[#allocation6 + $0x8] sm:$0xff] (!%p2192_p4)  ;;  %s1498_s7 = smov (!%p2192_p4), 1   ;;  %v1499_v2 = vmov (!%p2192_p4), 0.0  }
  0x6f   : > { %233 = sbr.rel (%p2192_p4) target bundleno = 118 (0x76), region = 48  ;;  %236 = vst [vmem:[#allocation2] sm:$0xff] (!%p2192_p4), %v234_v0  ;;  %238 = vst [vmem:[#allocation3] sm:$0xff] (!%p2192_p4), %v234_v0  ;;  %243 = sst [smem:[#allocation5]] (!%p2192_p4), %s1498_s7 }
  0x70   : > { %237 = vst [vmem:[#allocation2 + $0x8] sm:$0xff] (!%p2192_p4), %v235_v1  ;;  %239 = vst [vmem:[#allocation3 + $0x8] sm:$0xff] (!%p2192_p4), %v235_v1 }
  0x71   : > { %240 = vst [vmem:[#allocation4] sm:$0xff] (!%p2192_p4), %v1499_v2  ;;  %241 = vst [vmem:[#allocation4 + $0x8] sm:$0xff] (!%p2192_p4), %v1499_v2 }
  0x76 PF: > { %v1701_v3 = vld [vmem:[#allocation9 + $0x4] ss:$8 sps:$4 sm:$0xff]   ;;  %v1703_v4 = vld [vmem:[#allocation9] ss:$8 sps:$4 sm:$0xff]   ;;  %v1706_v5 = vld [vmem:[#allocation9 + $0x14] ss:$8 sps:$4 sm:$0xff]  }
  0x77   : > { %442 = vmatprep.subr.bf16.mxu0 %v1701_v3  ;;  %v1709_v6 = vld [vmem:[#allocation9 + $0x10] ss:$8 sps:$4 sm:$0xff]   ;;  %v1712_v7 = vld [vmem:[#allocation9 + $0x24] ss:$8 sps:$4 sm:$0xff]   ;;  %v1715_v8 = vld [vmem:[#allocation9 + $0x20] ss:$8 sps:$4 sm:$0xff]  }
  0x78   : > { %443 = vmatpush1.bf16.msra.mxu0 %v1703_v4  ;;  %v1718_v9 = vld [vmem:[#allocation9 + $0x34] ss:$8 sps:$4 sm:$0xff]   ;;  %v1721_v10 = vld [vmem:[#allocation9 + $0x30] ss:$8 sps:$4 sm:$0xff]   ;;  %v1724_v11 = vld [vmem:[#allocation9 + $0x44] ss:$8 sps:$4 sm:$0xff]  }
  0x79   : > { %444 = vmatprep.subr.bf16.mxu0 %v1706_v5  ;;  %v1727_v12 = vld [vmem:[#allocation9 + $0x40] ss:$8 sps:$4 sm:$0xff]   ;;  %v1730_v13 = vld [vmem:[#allocation9 + $0x54] ss:$8 sps:$4 sm:$0xff]   ;;  %v1733_v14 = vld [vmem:[#allocation9 + $0x50] ss:$8 sps:$4 sm:$0xff]  }
  0x7a   : > { %v1736_v15 = vld [vmem:[#allocation9 + $0x64] ss:$8 sps:$4 sm:$0xff]   ;;  %v1739_v18 = vld [vmem:[#allocation9 + $0x60] ss:$8 sps:$4 sm:$0xff]   ;;  %v1742_v19 = vld [vmem:[#allocation9 + $0x74] ss:$8 sps:$4 sm:$0xff]  }
  0x7b   : > { %v277_v16 = vld [vmem:[#allocation2 + $0x8] sm:$0xff]  ;;  %v1745_v20 = vld [vmem:[#allocation9 + $0x70] ss:$8 sps:$4 sm:$0xff]   ;;  %v1754_v23 = vld [vmem:[#allocation9 + $0x94] ss:$8 sps:$4 sm:$0xff]   ;;  %s487_s25 = smul.u32 10, %s1546_s19 }
  0x7c   : > { %445 = vmatpush1.bf16.msra.mxu0 %v1709_v6  ;;  %v281_v17 = vpack.c.bf16 %v277_v16, %v277_v16  ;;  %v1748_v21 = vld [vmem:[#allocation9 + $0x84] ss:$8 sps:$4 sm:$0xff]   ;;  %v1751_v22 = vld [vmem:[#allocation9 + $0x80] ss:$8 sps:$4 sm:$0xff]   ;;  %v1757_v24 = vld [vmem:[#allocation9 + $0x90] ss:$8 sps:$4 sm:$0xff]  }
  0x7d   : > { %446 = vmatprep.subr.bf16.mxu0 %v1712_v7  ;;  %v1760_v25 = vld [vmem:[#allocation9 + $0xa4] ss:$8 sps:$4 sm:$0xff]   ;;  %v1763_v26 = vld [vmem:[#allocation9 + $0xa0] ss:$8 sps:$4 sm:$0xff]   ;;  %v1766_v27 = vld [vmem:[#allocation9 + $0xb4] ss:$8 sps:$4 sm:$0xff]  }
  0x7e   : > { %474 = vmatprep.mubr.bf16.mxu0 %v281_v17  ;;  %v1769_v28 = vld [vmem:[#allocation9 + $0xb0] ss:$8 sps:$4 sm:$0xff]   ;;  %v1772_v29 = vld [vmem:[#allocation9 + $0xc4] ss:$8 sps:$4 sm:$0xff]   ;;  %v1775_v30 = vld [vmem:[#allocation9 + $0xc0] ss:$8 sps:$4 sm:$0xff]  }
  0x7f   : > { %v1778_v31 = vld [vmem:[#allocation9 + $0xd4] ss:$8 sps:$4 sm:$0xff]   ;;  %v1781_v32 = vld [vmem:[#allocation9 + $0xd0] ss:$8 sps:$4 sm:$0xff]   ;;  %v1784_v33 = vld [vmem:[#allocation9 + $0xe4] ss:$8 sps:$4 sm:$0xff]  }
  0x80   : > { %447 = vmatpush1.bf16.msra.mxu0 %v1715_v8  ;;  %v1787_v34 = vld [vmem:[#allocation9 + $0xe0] ss:$8 sps:$4 sm:$0xff]   ;;  %v1790_v35 = vld [vmem:[#allocation9 + $0xf4] ss:$8 sps:$4 sm:$0xff]   ;;  %v1793_v36 = vld [vmem:[#allocation9 + $0xf0] ss:$8 sps:$4 sm:$0xff]  }
  0x81   : > { %448 = vmatprep.subr.bf16.mxu0 %v1718_v9  ;;  %v276_v37 = vld [vmem:[#allocation2] sm:$0xff]  ;;  %v279_v40 = vld [vmem:[%s1693_s30 + $0x8] sm:$0xff]  ;;  %p1135_p7 = scmp.lt.s32.totalorder %s487_s25, 20 }
  0x82   : > { %v280_v38 = vpack.c.bf16 %v276_v37, %v276_v37  ;;  %v278_v39 = vld [vmem:[%s1693_s30] sm:$0xff]  ;;  %s492_s8 = sld [smem:[#allocation5]] (!%p1135_p7)  ;;  %v500_v53 = vld [vmem:[#allocation3] sm:$0xff] (!%p1135_p7)  ;;  %v501_v54 = vld [vmem:[#allocation3 + $0x8] sm:$0xff] (!%p1135_p7) }
  0x83   : > { %v509_v0 = vld [vmem:[#allocation4] sm:$0xff] (!%p1135_p7)  ;;  %v510_v1 = vld [vmem:[#allocation4 + $0x8] sm:$0xff] (!%p1135_p7) }
  0x84   : > { %449 = vmatpush1.bf16.msra.mxu0 %v1721_v10 }
  0x85   : > { %450 = vmatprep.subr.bf16.mxu0 %v1724_v11 }
  0x88   : > { %451 = vmatpush1.bf16.msra.mxu0 %v1727_v12  ;;  %s493_s29 = sadd.s32 (!%p1135_p7), 1, %s492_s8 }
  0x89   : > { %452 = vmatprep.subr.bf16.mxu0 %v1730_v13  ;;  %495 = sst [smem:[#allocation5]] (!%p1135_p7), %s493_s29  ;;  %s496_s5 = scvt.s32.f32 (!%p1135_p7), %s493_s29 }
  0x8b   : > { %v497_v51 = vstv (!%p1135_p7), %s496_s5 }
  0x8c   : > { %453 = vmatpush1.bf16.msra.mxu0 %v1733_v14  ;;  %1297 = vrcp.f32 (!%p1135_p7), %v497_v51 }
  0x8d   : > { %454 = vmatprep.subr.bf16.mxu0 %v1736_v15 }
  0x90   : > { %455 = vmatpush1.bf16.msra.mxu0 %v1739_v18 }
  0x91   : > { %456 = vmatprep.subr.bf16.mxu0 %v1742_v19 }
  0x94   : > { %457 = vmatpush1.bf16.msra.mxu0 %v1745_v20 }
  0x95   : > { %458 = vmatprep.subr.bf16.mxu0 %v1748_v21 }
  0x96   : > { %v1298_v52 = vpop.eup (!%p1135_p7), %1297 }
  0x97   : > { %1167 = vpush (!%p1135_p7), %v1298_v52 }
  0x98   : > { %459 = vmatpush1.bf16.msra.mxu0 %v1751_v22 }
  0x99   : > { %460 = vmatprep.subr.bf16.mxu0 %v1754_v23 }
  0x9c   : > { %461 = vmatpush1.bf16.msra.mxu0 %v1757_v24 }
  0x9d   : > { %462 = vmatprep.subr.bf16.mxu0 %v1760_v25 }
  0xa0   : > { %463 = vmatpush1.bf16.msra.mxu0 %v1763_v26 }
  0xa1   : > { %464 = vmatprep.subr.bf16.mxu0 %v1766_v27 }
  0xa4   : > { %465 = vmatpush1.bf16.msra.mxu0 %v1769_v28 }
  0xa5   : > { %466 = vmatprep.subr.bf16.mxu0 %v1772_v29 }
  0xa8   : > { %467 = vmatpush1.bf16.msra.mxu0 %v1775_v30 }
  0xa9   : > { %468 = vmatprep.subr.bf16.mxu0 %v1778_v31 }
  0xac   : > { %469 = vmatpush1.bf16.msra.mxu0 %v1781_v32 }
  0xad   : > { %470 = vmatprep.subr.bf16.mxu0 %v1784_v33 }
  0xb0   : > { %471 = vmatpush1.bf16.msra.mxu0 %v1787_v34 }
  0xb1   : > { %472 = vmatprep.subr.bf16.mxu0 %v1790_v35 }
  0xb4   : > { %473 = vmatpush1.bf16.msra.mxu0 %v1793_v36 }
  0xb7   : > { %475 = vmatmul.mubr.bf16.vlgmr.msra.gmra.mrb[0].mxu0 %v280_v38 }
  0xc8   : > { %s1168_s18 = spop (!%p1135_p7), %1167 }
  0xc9   : > { %v504_v57 = vstv (!%p1135_p7), %s1168_s18 }
 0x18a   : > { %v476_v41 = vpop.f32.mrb[0].mxu0  ;;  %491 = sbr.rel (%p1135_p7) target bundleno = 415 (0x19f), region = 52 }
 0x18b   : > { %v477_v42 = vadd.f32 %v476_v41, %v278_v39  ;;  %v478_v43 = vpop.f32.mrb[1].mxu0 }
 0x18c   : > { %v479_v44 = vadd.f32 %v478_v43, %v279_v40  ;;  %v480_v45 = vpop.f32.mrb[2].mxu0 }
 0x18d   : > { %v483_v46 = vmax.f32 %v477_v42, -1.0  ;;  %v481_v47 = vpop.f32.mrb[3].mxu0 }
 0x18e   : > { %v484_v48 = vmax.f32 %v479_v44, -1.0 }
 0x18f   : > { %v1800_v49 = vmin.f32 %v483_v46, 2.0 }
 0x190   : > { %v486_v50 = vmin.f32 %v484_v48, 2.0 }
 0x191   : > { %v502_v55 = vsub.f32 %v1800_v49, %v500_v53 }
 0x192   : > { %v503_v56 = vsub.f32 %v486_v50, %v501_v54 }
 0x193   : > { %v505_v58 = vmul.f32 %v504_v57, %v502_v55 }
 0x194   : > { %v506_v59 = vmul.f32 %v504_v57, %v503_v56 }
 0x195   : > { %v507_v60 = vadd.f32 %v505_v58, %v500_v53 }
 0x196   : > { %v508_v61 = vadd.f32 %v506_v59, %v501_v54 }
 0x197   : > { %v511_v62 = vsub.f32 %v1800_v49, %v507_v60  ;;  %519 = vst [vmem:[#allocation3] sm:$0xff] %v507_v60 }
 0x198   : > { %v512_v63 = vsub.f32 %v486_v50, %v508_v61  ;;  %520 = vst [vmem:[#allocation3 + $0x8] sm:$0xff] %v508_v61 }
 0x199   : > { %v513_v2 = vmul.f32 %v511_v62, %v502_v55 }
 0x19a   : > { %v514_v16 = vmul.f32 %v512_v63, %v503_v56 }
 0x19b   : > { %v515_v17 = vadd.f32 %v513_v2, %v509_v0 }
 0x19c   : > { %v516_v37 = vadd.f32 %v514_v16, %v510_v1 }
 0x19d   : > { %517 = vst [vmem:[#allocation4] sm:$0xff] %v515_v17 }
 0x19e   : > { %518 = vst [vmem:[#allocation4 + $0x8] sm:$0xff] %v516_v37 }
 0x19f PF: > { %526 = vmatprep.subr.bf16.mxu1 %v1701_v3  ;;  %v525_v38 = vpack.c.bf16 %v486_v50, %v486_v50  ;;  %576 = vmatprep.subr.bf16.mxu0 %v1701_v3  ;;  %v524_v39 = vpack.c.bf16 %v1800_v49, %v1800_v49  ;;  %v1136_v40 = vld [vmem:[%s1693_s30 + $0x10] sm:$0xff]  ;;  %v1137_v41 = vld [vmem:[%s1693_s30 + $0x18] sm:$0xff]  ;;  %v1138_v54 = vld [vmem:[%s1693_s30 + $0x20] sm:$0xff]  ;;  %p1154_p11 = scmp.ne.s32.totalorder %s1546_s19, 9 }
 0x1a0   : > { %527 = vmatpush1.bf16.msra.mxu1 %v1703_v4  ;;  %577 = vmatpush1.bf16.msra.mxu0 %v1703_v4  ;;  %v1139_v55 = vld [vmem:[%s1693_s30 + $0x28] sm:$0xff]  ;;  %v1140_v17 = vld [vmem:[%s1693_s30 + $0x30] sm:$0xff]  ;;  %v1141_v37 = vld [vmem:[%s1693_s30 + $0x38] sm:$0xff]  ;;  %s981_s9 = sld [smem:[#allocation5]] (!%p1154_p11) }
 0x1a1   : > { %528 = vmatprep.subr.bf16.mxu1 %v1706_v5  ;;  %558 = vmatprep.mubr.bf16.mxu1 %v525_v38 }
 0x1a2   : > { %578 = vmatprep.subr.bf16.mxu0 %v1706_v5 }
 0x1a4   : > { %529 = vmatpush1.bf16.msra.mxu1 %v1709_v6  ;;  %579 = vmatpush1.bf16.msra.mxu0 %v1709_v6 }
 0x1a5   : > { %530 = vmatprep.subr.bf16.mxu1 %v1712_v7  ;;  %580 = vmatprep.subr.bf16.mxu0 %v1712_v7 }
 0x1a6   : > { %s1155_s28 = sadd.s32 (!%p1154_p11), 4294967295, %s981_s9 }
 0x1a7   : > { %p983_p12 = scmp.gt.s32.totalorder (!%p1154_p11), %s1155_s28, 1 }
 0x1a8   : > { %531 = vmatpush1.bf16.msra.mxu1 %v1715_v8  ;;  %581 = vmatpush1.bf16.msra.mxu0 %v1715_v8 }
 0x1a9   : > { %532 = vmatprep.subr.bf16.mxu1 %v1718_v9  ;;  %582 = vmatprep.subr.bf16.mxu0 %v1718_v9 }
 0x1ac   : > { %533 = vmatpush1.bf16.msra.mxu1 %v1721_v10  ;;  %583 = vmatpush1.bf16.msra.mxu0 %v1721_v10 }
 0x1ad   : > { %534 = vmatprep.subr.bf16.mxu1 %v1724_v11  ;;  %584 = vmatprep.subr.bf16.mxu0 %v1724_v11 }
 0x1b0   : > { %535 = vmatpush1.bf16.msra.mxu1 %v1727_v12  ;;  %585 = vmatpush1.bf16.msra.mxu0 %v1727_v12 }
 0x1b1   : > { %536 = vmatprep.subr.bf16.mxu1 %v1730_v13  ;;  %586 = vmatprep.subr.bf16.mxu0 %v1730_v13 }
 0x1b4   : > { %537 = vmatpush1.bf16.msra.mxu1 %v1733_v14  ;;  %587 = vmatpush1.bf16.msra.mxu0 %v1733_v14 }
 0x1b5   : > { %538 = vmatprep.subr.bf16.mxu1 %v1736_v15  ;;  %588 = vmatprep.subr.bf16.mxu0 %v1736_v15 }
 0x1b8   : > { %539 = vmatpush1.bf16.msra.mxu1 %v1739_v18  ;;  %589 = vmatpush1.bf16.msra.mxu0 %v1739_v18 }
 0x1b9   : > { %540 = vmatprep.subr.bf16.mxu1 %v1742_v19  ;;  %590 = vmatprep.subr.bf16.mxu0 %v1742_v19 }
 0x1bc   : > { %541 = vmatpush1.bf16.msra.mxu1 %v1745_v20  ;;  %591 = vmatpush1.bf16.msra.mxu0 %v1745_v20 }
 0x1bd   : > { %542 = vmatprep.subr.bf16.mxu1 %v1748_v21  ;;  %592 = vmatprep.subr.bf16.mxu0 %v1748_v21 }
 0x1c0   : > { %543 = vmatpush1.bf16.msra.mxu1 %v1751_v22  ;;  %593 = vmatpush1.bf16.msra.mxu0 %v1751_v22 }
 0x1c1   : > { %544 = vmatprep.subr.bf16.mxu1 %v1754_v23  ;;  %594 = vmatprep.subr.bf16.mxu0 %v1754_v23 }
 0x1c4   : > { %545 = vmatpush1.bf16.msra.mxu1 %v1757_v24  ;;  %595 = vmatpush1.bf16.msra.mxu0 %v1757_v24 }
 0x1c5   : > { %546 = vmatprep.subr.bf16.mxu1 %v1760_v25  ;;  %596 = vmatprep.subr.bf16.mxu0 %v1760_v25 }
 0x1c8   : > { %547 = vmatpush1.bf16.msra.mxu1 %v1763_v26  ;;  %597 = vmatpush1.bf16.msra.mxu0 %v1763_v26 }
 0x1c9   : > { %548 = vmatprep.subr.bf16.mxu1 %v1766_v27  ;;  %598 = vmatprep.subr.bf16.mxu0 %v1766_v27 }
 0x1cc   : > { %549 = vmatpush1.bf16.msra.mxu1 %v1769_v28  ;;  %599 = vmatpush1.bf16.msra.mxu0 %v1769_v28 }
 0x1cd   : > { %550 = vmatprep.subr.bf16.mxu1 %v1772_v29  ;;  %600 = vmatprep.subr.bf16.mxu0 %v1772_v29 }
 0x1d0   : > { %551 = vmatpush1.bf16.msra.mxu1 %v1775_v30  ;;  %601 = vmatpush1.bf16.msra.mxu0 %v1775_v30 }
 0x1d1   : > { %552 = vmatprep.subr.bf16.mxu1 %v1778_v31  ;;  %602 = vmatprep.subr.bf16.mxu0 %v1778_v31 }
 0x1d4   : > { %553 = vmatpush1.bf16.msra.mxu1 %v1781_v32  ;;  %603 = vmatpush1.bf16.msra.mxu0 %v1781_v32 }
 0x1d5   : > { %554 = vmatprep.subr.bf16.mxu1 %v1784_v33  ;;  %604 = vmatprep.subr.bf16.mxu0 %v1784_v33 }
 0x1d8   : > { %555 = vmatpush1.bf16.msra.mxu1 %v1787_v34  ;;  %605 = vmatpush1.bf16.msra.mxu0 %v1787_v34 }
 0x1d9   : > { %556 = vmatprep.subr.bf16.mxu1 %v1790_v35  ;;  %606 = vmatprep.subr.bf16.mxu0 %v1790_v35 }
 0x1dc   : > { %557 = vmatpush1.bf16.msra.mxu1 %v1793_v36  ;;  %607 = vmatpush1.bf16.msra.mxu0 %v1793_v36 }
 0x1dd   : > { %626 = vmatprep.subr.bf16.mxu1 %v1701_v3  ;;  %676 = vmatprep.subr.bf16.mxu0 %v1701_v3 }
 0x1df   : > { %559 = vmatmul.mubr.bf16.vlgmr.msra.gmra.mrb[0].mxu1 %v524_v39 }
 0x1e0   : > { %627 = vmatpush1.bf16.msra.mxu1 %v1703_v4 }
 0x1e1   : > { %628 = vmatprep.subr.bf16.mxu1 %v1706_v5 }
 0x1e4   : > { %629 = vmatpush1.bf16.msra.mxu1 %v1709_v6 }
 0x1e5   : > { %630 = vmatprep.subr.bf16.mxu1 %v1712_v7 }
 0x1e8   : > { %631 = vmatpush1.bf16.msra.mxu1 %v1715_v8 }
 0x1e9   : > { %632 = vmatprep.subr.bf16.mxu1 %v1718_v9 }
 0x1ec   : > { %633 = vmatpush1.bf16.msra.mxu1 %v1721_v10 }
 0x1ed   : > { %634 = vmatprep.subr.bf16.mxu1 %v1724_v11 }
 0x1f0   : > { %635 = vmatpush1.bf16.msra.mxu1 %v1727_v12 }
 0x1f1   : > { %636 = vmatprep.subr.bf16.mxu1 %v1730_v13 }
 0x1f4   : > { %637 = vmatpush1.bf16.msra.mxu1 %v1733_v14 }
 0x1f5   : > { %638 = vmatprep.subr.bf16.mxu1 %v1736_v15 }
 0x1f8   : > { %639 = vmatpush1.bf16.msra.mxu1 %v1739_v18 }
 0x1f9   : > { %640 = vmatprep.subr.bf16.mxu1 %v1742_v19 }
 0x1fc   : > { %641 = vmatpush1.bf16.msra.mxu1 %v1745_v20 }
 0x1fd   : > { %642 = vmatprep.subr.bf16.mxu1 %v1748_v21 }
 0x200   : > { %643 = vmatpush1.bf16.msra.mxu1 %v1751_v22 }
 0x201   : > { %644 = vmatprep.subr.bf16.mxu1 %v1754_v23 }
 0x204   : > { %645 = vmatpush1.bf16.msra.mxu1 %v1757_v24 }
 0x205   : > { %646 = vmatprep.subr.bf16.mxu1 %v1760_v25 }
 0x208   : > { %647 = vmatpush1.bf16.msra.mxu1 %v1763_v26 }
 0x209   : > { %648 = vmatprep.subr.bf16.mxu1 %v1766_v27 }
 0x20c   : > { %649 = vmatpush1.bf16.msra.mxu1 %v1769_v28 }
 0x20d   : > { %650 = vmatprep.subr.bf16.mxu1 %v1772_v29 }
 0x210   : > { %651 = vmatpush1.bf16.msra.mxu1 %v1775_v30 }
 0x211   : > { %652 = vmatprep.subr.bf16.mxu1 %v1778_v31 }
 0x214   : > { %653 = vmatpush1.bf16.msra.mxu1 %v1781_v32 }
 0x215   : > { %654 = vmatprep.subr.bf16.mxu1 %v1784_v33 }
 0x218   : > { %655 = vmatpush1.bf16.msra.mxu1 %v1787_v34 }
 0x219   : > { %656 = vmatprep.subr.bf16.mxu1 %v1790_v35 }
 0x21c   : > { %657 = vmatpush1.bf16.msra.mxu1 %v1793_v36 }
 0x21d   : > { %726 = vmatprep.subr.bf16.mxu1 %v1701_v3 }
 0x2b2   : > { %v560_v42 = vpop.f32.mrb[0].mxu1 }
 0x2b3   : > { %v561_v43 = vadd.f32 %v1136_v40, %v560_v42  ;;  %v562_v44 = vpop.f32.mrb[1].mxu1 }
 0x2b4   : > { %v563_v45 = vadd.f32 %v1137_v41, %v562_v44  ;;  %v564_v46 = vpop.f32.mrb[2].mxu1 }
 0x2b5   : > { %v567_v47 = vmax.f32 %v561_v43, -1.0  ;;  %v565_v48 = vpop.f32.mrb[3].mxu1 }
 0x2b6   : > { %v568_v49 = vmax.f32 %v563_v45, -1.0 }
 0x2b7   : > { %v569_v50 = vmin.f32 %v567_v47, 2.0 }
 0x2b8   : > { %v570_v51 = vmin.f32 %v568_v49, 2.0 }
 0x2b9   : > { %v574_v53 = vpack.c.bf16 %v569_v50, %v569_v50  ;;  %v1142_v50 = vld [vmem:[%s1693_s30 + $0x40] sm:$0xff] }
 0x2ba   : > { %v575_v52 = vpack.c.bf16 %v570_v51, %v570_v51  ;;  %v1143_v51 = vld [vmem:[%s1693_s30 + $0x48] sm:$0xff] }
 0x2bc   : > { %608 = vmatprep.mubr.bf16.mxu0 %v575_v52 }
 0x2bd   : > { %609 = vmatmul.mubr.bf16.vlgmr.msra.gmra.mrb[4].mxu0 %v574_v53 }
 0x2be   : > { %677 = vmatpush1.bf16.msra.mxu0 %v1703_v4 }
 0x2bf   : > { %678 = vmatprep.subr.bf16.mxu0 %v1706_v5 }
 0x2c2   : > { %679 = vmatpush1.bf16.msra.mxu0 %v1709_v6 }
 0x2c3   : > { %680 = vmatprep.subr.bf16.mxu0 %v1712_v7 }
 0x2c6   : > { %681 = vmatpush1.bf16.msra.mxu0 %v1715_v8 }
 0x2c7   : > { %682 = vmatprep.subr.bf16.mxu0 %v1718_v9 }
 0x2ca   : > { %683 = vmatpush1.bf16.msra.mxu0 %v1721_v10 }
 0x2cb   : > { %684 = vmatprep.subr.bf16.mxu0 %v1724_v11 }
 0x2ce   : > { %685 = vmatpush1.bf16.msra.mxu0 %v1727_v12 }
 0x2cf   : > { %686 = vmatprep.subr.bf16.mxu0 %v1730_v13 }
 0x2d2   : > { %687 = vmatpush1.bf16.msra.mxu0 %v1733_v14 }
 0x2d3   : > { %688 = vmatprep.subr.bf16.mxu0 %v1736_v15 }
 0x2d6   : > { %689 = vmatpush1.bf16.msra.mxu0 %v1739_v18 }
 0x2d7   : > { %690 = vmatprep.subr.bf16.mxu0 %v1742_v19 }
 0x2da   : > { %691 = vmatpush1.bf16.msra.mxu0 %v1745_v20 }
 0x2db   : > { %692 = vmatprep.subr.bf16.mxu0 %v1748_v21 }
 0x2de   : > { %693 = vmatpush1.bf16.msra.mxu0 %v1751_v22 }
 0x2df   : > { %694 = vmatprep.subr.bf16.mxu0 %v1754_v23 }
 0x2e2   : > { %695 = vmatpush1.bf16.msra.mxu0 %v1757_v24 }
 0x2e3   : > { %696 = vmatprep.subr.bf16.mxu0 %v1760_v25 }
 0x2e6   : > { %697 = vmatpush1.bf16.msra.mxu0 %v1763_v26 }
 0x2e7   : > { %698 = vmatprep.subr.bf16.mxu0 %v1766_v27 }
 0x2ea   : > { %699 = vmatpush1.bf16.msra.mxu0 %v1769_v28 }
 0x2eb   : > { %700 = vmatprep.subr.bf16.mxu0 %v1772_v29 }
 0x2ee   : > { %701 = vmatpush1.bf16.msra.mxu0 %v1775_v30 }
 0x2ef   : > { %702 = vmatprep.subr.bf16.mxu0 %v1778_v31 }
 0x2f2   : > { %703 = vmatpush1.bf16.msra.mxu0 %v1781_v32 }
 0x2f3   : > { %704 = vmatprep.subr.bf16.mxu0 %v1784_v33 }
 0x2f6   : > { %705 = vmatpush1.bf16.msra.mxu0 %v1787_v34 }
 0x2f7   : > { %706 = vmatprep.subr.bf16.mxu0 %v1790_v35 }
 0x2fa   : > { %707 = vmatpush1.bf16.msra.mxu0 %v1793_v36 }
 0x2fb   : > { %776 = vmatprep.subr.bf16.mxu0 %v1701_v3 }
 0x390   : > { %v610_v56 = vpop.f32.mrb[4].mxu0 }
 0x391   : > { %v611_v57 = vadd.f32 %v1138_v54, %v610_v56  ;;  %v612_v58 = vpop.f32.mrb[5].mxu0 }
 0x392   : > { %v613_v59 = vadd.f32 %v1139_v55, %v612_v58  ;;  %v614_v60 = vpop.f32.mrb[6].mxu0 }
 0x393   : > { %v617_v61 = vmax.f32 %v611_v57, -1.0  ;;  %v615_v62 = vpop.f32.mrb[7].mxu0 }
 0x394   : > { %v618_v63 = vmax.f32 %v613_v59, -1.0 }
 0x395   : > { %v619_v0 = vmin.f32 %v617_v61, 2.0 }
 0x396   : > { %v620_v1 = vmin.f32 %v618_v63, 2.0 }
 0x397   : > { %v624_v16 = vpack.c.bf16 %v619_v0, %v619_v0  ;;  %v1144_v0 = vld [vmem:[%s1693_s30 + $0x50] sm:$0xff] }
 0x398   : > { %v625_v2 = vpack.c.bf16 %v620_v1, %v620_v1  ;;  %v1145_v1 = vld [vmem:[%s1693_s30 + $0x58] sm:$0xff] }
 0x39a   : > { %658 = vmatprep.mubr.bf16.mxu1 %v625_v2 }
 0x39b   : > { %659 = vmatmul.mubr.bf16.vlgmr.msra.gmra.mrb[4].mxu1 %v624_v16 }
 0x39c   : > { %727 = vmatpush1.bf16.msra.mxu1 %v1703_v4 }
 0x39d   : > { %728 = vmatprep.subr.bf16.mxu1 %v1706_v5 }
 0x3a0   : > { %729 = vmatpush1.bf16.msra.mxu1 %v1709_v6 }
 0x3a1   : > { %730 = vmatprep.subr.bf16.mxu1 %v1712_v7 }
 0x3a4   : > { %731 = vmatpush1.bf16.msra.mxu1 %v1715_v8 }
 0x3a5   : > { %732 = vmatprep.subr.bf16.mxu1 %v1718_v9 }
 0x3a8   : > { %733 = vmatpush1.bf16.msra.mxu1 %v1721_v10 }
 0x3a9   : > { %734 = vmatprep.subr.bf16.mxu1 %v1724_v11 }
 0x3ac   : > { %735 = vmatpush1.bf16.msra.mxu1 %v1727_v12 }
 0x3ad   : > { %736 = vmatprep.subr.bf16.mxu1 %v1730_v13 }
 0x3b0   : > { %737 = vmatpush1.bf16.msra.mxu1 %v1733_v14 }
 0x3b1   : > { %738 = vmatprep.subr.bf16.mxu1 %v1736_v15 }
 0x3b4   : > { %739 = vmatpush1.bf16.msra.mxu1 %v1739_v18 }
 0x3b5   : > { %740 = vmatprep.subr.bf16.mxu1 %v1742_v19 }
 0x3b8   : > { %741 = vmatpush1.bf16.msra.mxu1 %v1745_v20 }
 0x3b9   : > { %742 = vmatprep.subr.bf16.mxu1 %v1748_v21 }
 0x3bc   : > { %743 = vmatpush1.bf16.msra.mxu1 %v1751_v22 }
 0x3bd   : > { %744 = vmatprep.subr.bf16.mxu1 %v1754_v23 }
 0x3c0   : > { %745 = vmatpush1.bf16.msra.mxu1 %v1757_v24 }
 0x3c1   : > { %746 = vmatprep.subr.bf16.mxu1 %v1760_v25 }
 0x3c4   : > { %747 = vmatpush1.bf16.msra.mxu1 %v1763_v26 }
 0x3c5   : > { %748 = vmatprep.subr.bf16.mxu1 %v1766_v27 }
 0x3c8   : > { %749 = vmatpush1.bf16.msra.mxu1 %v1769_v28 }
 0x3c9   : > { %750 = vmatprep.subr.bf16.mxu1 %v1772_v29 }
 0x3cc   : > { %751 = vmatpush1.bf16.msra.mxu1 %v1775_v30 }
 0x3cd   : > { %752 = vmatprep.subr.bf16.mxu1 %v1778_v31 }
 0x3d0   : > { %753 = vmatpush1.bf16.msra.mxu1 %v1781_v32 }
 0x3d1   : > { %754 = vmatprep.subr.bf16.mxu1 %v1784_v33 }
 0x3d4   : > { %755 = vmatpush1.bf16.msra.mxu1 %v1787_v34 }
 0x3d5   : > { %756 = vmatprep.subr.bf16.mxu1 %v1790_v35 }
 0x3d8   : > { %757 = vmatpush1.bf16.msra.mxu1 %v1793_v36 }
 0x3d9   : > { %826 = vmatprep.subr.bf16.mxu1 %v1701_v3 }
 0x46e   : > { %v660_v38 = vpop.f32.mrb[4].mxu1 }
 0x46f   : > { %v661_v39 = vadd.f32 %v1140_v17, %v660_v38  ;;  %v662_v40 = vpop.f32.mrb[5].mxu1 }
 0x470   : > { %v663_v41 = vadd.f32 %v1141_v37, %v662_v40  ;;  %v664_v42 = vpop.f32.mrb[6].mxu1 }
 0x471   : > { %v667_v43 = vmax.f32 %v661_v39, -1.0  ;;  %v665_v44 = vpop.f32.mrb[7].mxu1 }
 0x472   : > { %v668_v45 = vmax.f32 %v663_v41, -1.0 }
 0x473   : > { %v669_v46 = vmin.f32 %v667_v43, 2.0 }
 0x474   : > { %v670_v47 = vmin.f32 %v668_v45, 2.0 }
 0x475   : > { %v674_v49 = vpack.c.bf16 %v669_v46, %v669_v46  ;;  %v1147_v46 = vld [vmem:[%s1693_s30 + $0x68] sm:$0xff] }
 0x476   : > { %v675_v48 = vpack.c.bf16 %v670_v47, %v670_v47 }
 0x478   : > { %708 = vmatprep.mubr.bf16.mxu0 %v675_v48 }
 0x479   : > { %709 = vmatmul.mubr.bf16.vlgmr.msra.gmra.mrb[8].mxu0 %v674_v49 }
 0x47a   : > { %777 = vmatpush1.bf16.msra.mxu0 %v1703_v4 }
 0x47b   : > { %778 = vmatprep.subr.bf16.mxu0 %v1706_v5 }
 0x47e   : > { %779 = vmatpush1.bf16.msra.mxu0 %v1709_v6 }
 0x47f   : > { %780 = vmatprep.subr.bf16.mxu0 %v1712_v7 }
 0x482   : > { %781 = vmatpush1.bf16.msra.mxu0 %v1715_v8 }
 0x483   : > { %782 = vmatprep.subr.bf16.mxu0 %v1718_v9 }
 0x486   : > { %783 = vmatpush1.bf16.msra.mxu0 %v1721_v10 }
 0x487   : > { %784 = vmatprep.subr.bf16.mxu0 %v1724_v11 }
 0x48a   : > { %785 = vmatpush1.bf16.msra.mxu0 %v1727_v12 }
 0x48b   : > { %786 = vmatprep.subr.bf16.mxu0 %v1730_v13 }
 0x48e   : > { %787 = vmatpush1.bf16.msra.mxu0 %v1733_v14 }
 0x48f   : > { %788 = vmatprep.subr.bf16.mxu0 %v1736_v15 }
 0x492   : > { %789 = vmatpush1.bf16.msra.mxu0 %v1739_v18 }
 0x493   : > { %790 = vmatprep.subr.bf16.mxu0 %v1742_v19 }
 0x496   : > { %791 = vmatpush1.bf16.msra.mxu0 %v1745_v20 }
 0x497   : > { %792 = vmatprep.subr.bf16.mxu0 %v1748_v21 }
 0x49a   : > { %793 = vmatpush1.bf16.msra.mxu0 %v1751_v22 }
 0x49b   : > { %794 = vmatprep.subr.bf16.mxu0 %v1754_v23 }
 0x49e   : > { %795 = vmatpush1.bf16.msra.mxu0 %v1757_v24 }
 0x49f   : > { %796 = vmatprep.subr.bf16.mxu0 %v1760_v25 }
 0x4a2   : > { %797 = vmatpush1.bf16.msra.mxu0 %v1763_v26 }
 0x4a3   : > { %798 = vmatprep.subr.bf16.mxu0 %v1766_v27 }
 0x4a6   : > { %799 = vmatpush1.bf16.msra.mxu0 %v1769_v28 }
 0x4a7   : > { %800 = vmatprep.subr.bf16.mxu0 %v1772_v29 }
 0x4aa   : > { %801 = vmatpush1.bf16.msra.mxu0 %v1775_v30 }
 0x4ab   : > { %802 = vmatprep.subr.bf16.mxu0 %v1778_v31 }
 0x4ae   : > { %803 = vmatpush1.bf16.msra.mxu0 %v1781_v32 }
 0x4af   : > { %804 = vmatprep.subr.bf16.mxu0 %v1784_v33 }
 0x4b2   : > { %805 = vmatpush1.bf16.msra.mxu0 %v1787_v34 }
 0x4b3   : > { %806 = vmatprep.subr.bf16.mxu0 %v1790_v35 }
 0x4b6   : > { %807 = vmatpush1.bf16.msra.mxu0 %v1793_v36 }
 0x4b7   : > { %876 = vmatprep.subr.bf16.mxu0 %v1701_v3 }
 0x54c   : > { %v710_v52 = vpop.f32.mrb[8].mxu0 }
 0x54d   : > { %v711_v53 = vadd.f32 %v1142_v50, %v710_v52  ;;  %v712_v54 = vpop.f32.mrb[9].mxu0 }
 0x54e   : > { %v713_v55 = vadd.f32 %v1143_v51, %v712_v54  ;;  %v714_v56 = vpop.f32.mrb[10].mxu0 }
 0x54f   : > { %v717_v57 = vmax.f32 %v711_v53, -1.0  ;;  %v715_v58 = vpop.f32.mrb[11].mxu0 }
 0x550   : > { %v718_v59 = vmax.f32 %v713_v55, -1.0 }
 0x551   : > { %v719_v60 = vmin.f32 %v717_v57, 2.0 }
 0x552   : > { %v720_v61 = vmin.f32 %v718_v59, 2.0 }
 0x553   : > { %v724_v63 = vpack.c.bf16 %v719_v60, %v719_v60 }
 0x554   : > { %v725_v62 = vpack.c.bf16 %v720_v61, %v720_v61 }
 0x556   : > { %758 = vmatprep.mubr.bf16.mxu1 %v725_v62 }
 0x557   : > { %759 = vmatmul.mubr.bf16.vlgmr.msra.gmra.mrb[8].mxu1 %v724_v63 }
 0x558   : > { %827 = vmatpush1.bf16.msra.mxu1 %v1703_v4 }
 0x559   : > { %828 = vmatprep.subr.bf16.mxu1 %v1706_v5 }
 0x55c   : > { %829 = vmatpush1.bf16.msra.mxu1 %v1709_v6 }
 0x55d   : > { %830 = vmatprep.subr.bf16.mxu1 %v1712_v7 }
 0x560   : > { %831 = vmatpush1.bf16.msra.mxu1 %v1715_v8 }
 0x561   : > { %832 = vmatprep.subr.bf16.mxu1 %v1718_v9 }
 0x564   : > { %833 = vmatpush1.bf16.msra.mxu1 %v1721_v10 }
 0x565   : > { %834 = vmatprep.subr.bf16.mxu1 %v1724_v11 }
 0x568   : > { %835 = vmatpush1.bf16.msra.mxu1 %v1727_v12 }
 0x569   : > { %836 = vmatprep.subr.bf16.mxu1 %v1730_v13 }
 0x56c   : > { %837 = vmatpush1.bf16.msra.mxu1 %v1733_v14 }
 0x56d   : > { %838 = vmatprep.subr.bf16.mxu1 %v1736_v15 }
 0x570   : > { %839 = vmatpush1.bf16.msra.mxu1 %v1739_v18 }
 0x571   : > { %840 = vmatprep.subr.bf16.mxu1 %v1742_v19 }
 0x574   : > { %841 = vmatpush1.bf16.msra.mxu1 %v1745_v20 }
 0x575   : > { %842 = vmatprep.subr.bf16.mxu1 %v1748_v21 }
 0x578   : > { %843 = vmatpush1.bf16.msra.mxu1 %v1751_v22 }
 0x579   : > { %844 = vmatprep.subr.bf16.mxu1 %v1754_v23 }
 0x57c   : > { %845 = vmatpush1.bf16.msra.mxu1 %v1757_v24 }
 0x57d   : > { %846 = vmatprep.subr.bf16.mxu1 %v1760_v25 }
 0x580   : > { %847 = vmatpush1.bf16.msra.mxu1 %v1763_v26 }
 0x581   : > { %848 = vmatprep.subr.bf16.mxu1 %v1766_v27 }
 0x584   : > { %849 = vmatpush1.bf16.msra.mxu1 %v1769_v28 }
 0x585   : > { %850 = vmatprep.subr.bf16.mxu1 %v1772_v29 }
 0x588   : > { %851 = vmatpush1.bf16.msra.mxu1 %v1775_v30 }
 0x589   : > { %852 = vmatprep.subr.bf16.mxu1 %v1778_v31 }
 0x58c   : > { %853 = vmatpush1.bf16.msra.mxu1 %v1781_v32 }
 0x58d   : > { %854 = vmatprep.subr.bf16.mxu1 %v1784_v33 }
 0x590   : > { %855 = vmatpush1.bf16.msra.mxu1 %v1787_v34 }
 0x591   : > { %856 = vmatprep.subr.bf16.mxu1 %v1790_v35 }
 0x594   : > { %857 = vmatpush1.bf16.msra.mxu1 %v1793_v36 }
 0x595   : > { %926 = vmatprep.subr.bf16.mxu1 %v1701_v3  ;;  %v1146_v3 = vld [vmem:[%s1693_s30 + $0x60] sm:$0xff] }
 0x62a   : > { %v760_v2 = vpop.f32.mrb[8].mxu1 }
 0x62b   : > { %v761_v16 = vadd.f32 %v1144_v0, %v760_v2  ;;  %v762_v17 = vpop.f32.mrb[9].mxu1 }
 0x62c   : > { %v763_v37 = vadd.f32 %v1145_v1, %v762_v17  ;;  %v764_v38 = vpop.f32.mrb[10].mxu1  ;;  %v977_v17 = vld [vmem:[#allocation3] sm:$0xff] (!%p1154_p11) }
 0x62d   : > { %v767_v39 = vmax.f32 %v761_v16, -1.0  ;;  %v765_v40 = vpop.f32.mrb[11].mxu1  ;;  %979 = vst [vmem:[#allocation12] sm:$0xff] (!%p1154_p11), %v977_v17 }
 0x62e   : > { %v768_v41 = vmax.f32 %v763_v37, -1.0  ;;  %v978_v37 = vld [vmem:[#allocation3 + $0x8] sm:$0xff] (!%p1154_p11)  ;;  %v987_v40 = vld [vmem:[#allocation4 + $0x8] sm:$0xff] (!%p1154_p11) }
 0x62f   : > { %v769_v42 = vmin.f32 %v767_v39, 2.0  ;;  %980 = vst [vmem:[#allocation12 + $0x8] sm:$0xff] (!%p1154_p11), %v978_v37  ;;  %v986_v39 = vld [vmem:[#allocation4] sm:$0xff] (!%p1154_p11) }
 0x630   : > { %v770_v43 = vmin.f32 %v768_v41, 2.0 }
 0x631   : > { %v774_v45 = vpack.c.bf16 %v769_v42, %v769_v42 }
 0x632   : > { %v775_v44 = vpack.c.bf16 %v770_v43, %v770_v43 }
 0x634   : > { %808 = vmatprep.mubr.bf16.mxu0 %v775_v44 }
 0x635   : > { %809 = vmatmul.mubr.bf16.vlgmr.msra.gmra.mrb[12].mxu0 %v774_v45 }
 0x636   : > { %877 = vmatpush1.bf16.msra.mxu0 %v1703_v4 }
 0x637   : > { %878 = vmatprep.subr.bf16.mxu0 %v1706_v5 }
 0x63a   : > { %879 = vmatpush1.bf16.msra.mxu0 %v1709_v6 }
 0x63b   : > { %880 = vmatprep.subr.bf16.mxu0 %v1712_v7 }
 0x63e   : > { %881 = vmatpush1.bf16.msra.mxu0 %v1715_v8 }
 0x63f   : > { %882 = vmatprep.subr.bf16.mxu0 %v1718_v9 }
 0x642   : > { %883 = vmatpush1.bf16.msra.mxu0 %v1721_v10 }
 0x643   : > { %884 = vmatprep.subr.bf16.mxu0 %v1724_v11 }
 0x646   : > { %885 = vmatpush1.bf16.msra.mxu0 %v1727_v12 }
 0x647   : > { %886 = vmatprep.subr.bf16.mxu0 %v1730_v13 }
 0x64a   : > { %887 = vmatpush1.bf16.msra.mxu0 %v1733_v14 }
 0x64b   : > { %888 = vmatprep.subr.bf16.mxu0 %v1736_v15 }
 0x64e   : > { %889 = vmatpush1.bf16.msra.mxu0 %v1739_v18 }
 0x64f   : > { %890 = vmatprep.subr.bf16.mxu0 %v1742_v19 }
 0x652   : > { %891 = vmatpush1.bf16.msra.mxu0 %v1745_v20 }
 0x653   : > { %892 = vmatprep.subr.bf16.mxu0 %v1748_v21 }
 0x656   : > { %893 = vmatpush1.bf16.msra.mxu0 %v1751_v22 }
 0x657   : > { %894 = vmatprep.subr.bf16.mxu0 %v1754_v23 }
 0x65a   : > { %895 = vmatpush1.bf16.msra.mxu0 %v1757_v24 }
 0x65b   : > { %896 = vmatprep.subr.bf16.mxu0 %v1760_v25 }
 0x65e   : > { %897 = vmatpush1.bf16.msra.mxu0 %v1763_v26 }
 0x65f   : > { %898 = vmatprep.subr.bf16.mxu0 %v1766_v27 }
 0x662   : > { %899 = vmatpush1.bf16.msra.mxu0 %v1769_v28 }
 0x663   : > { %900 = vmatprep.subr.bf16.mxu0 %v1772_v29 }
 0x666   : > { %901 = vmatpush1.bf16.msra.mxu0 %v1775_v30 }
 0x667   : > { %902 = vmatprep.subr.bf16.mxu0 %v1778_v31 }
 0x66a   : > { %903 = vmatpush1.bf16.msra.mxu0 %v1781_v32 }
 0x66b   : > { %904 = vmatprep.subr.bf16.mxu0 %v1784_v33 }
 0x66e   : > { %905 = vmatpush1.bf16.msra.mxu0 %v1787_v34 }
 0x66f   : > { %906 = vmatprep.subr.bf16.mxu0 %v1790_v35 }
 0x672   : > { %907 = vmatpush1.bf16.msra.mxu0 %v1793_v36 }
 0x708   : > { %v810_v47 = vpop.f32.mrb[12].mxu0 }
 0x709   : > { %v811_v48 = vadd.f32 %v1146_v3, %v810_v47  ;;  %v812_v49 = vpop.f32.mrb[13].mxu0 }
 0x70a   : > { %v813_v50 = vadd.f32 %v1147_v46, %v812_v49  ;;  %v814_v51 = vpop.f32.mrb[14].mxu0 }
 0x70b   : > { %v817_v52 = vmax.f32 %v811_v48, -1.0  ;;  %v815_v53 = vpop.f32.mrb[15].mxu0 }
 0x70c   : > { %v818_v54 = vmax.f32 %v813_v50, -1.0 }
 0x70d   : > { %v819_v55 = vmin.f32 %v817_v52, 2.0 }
 0x70e   : > { %v820_v56 = vmin.f32 %v818_v54, 2.0 }
 0x70f   : > { %v824_v58 = vpack.c.bf16 %v819_v55, %v819_v55 }
 0x710   : > { %v825_v57 = vpack.c.bf16 %v820_v56, %v820_v56 }
 0x712   : > { %858 = vmatprep.mubr.bf16.mxu1 %v825_v57 }
 0x713   : > { %859 = vmatmul.mubr.bf16.vlgmr.msra.gmra.mrb[12].mxu1 %v824_v58 }
 0x714   : > { %927 = vmatpush1.bf16.msra.mxu1 %v1703_v4  ;;  %v1148_v4 = vld [vmem:[%s1693_s30 + $0x70] sm:$0xff] }
 0x715   : > { %928 = vmatprep.subr.bf16.mxu1 %v1706_v5  ;;  %v1149_v5 = vld [vmem:[%s1693_s30 + $0x78] sm:$0xff] }
 0x718   : > { %929 = vmatpush1.bf16.msra.mxu1 %v1709_v6 }
 0x719   : > { %930 = vmatprep.subr.bf16.mxu1 %v1712_v7 }
 0x71c   : > { %931 = vmatpush1.bf16.msra.mxu1 %v1715_v8 }
 0x71d   : > { %932 = vmatprep.subr.bf16.mxu1 %v1718_v9 }
 0x720   : > { %933 = vmatpush1.bf16.msra.mxu1 %v1721_v10 }
 0x721   : > { %934 = vmatprep.subr.bf16.mxu1 %v1724_v11 }
 0x724   : > { %935 = vmatpush1.bf16.msra.mxu1 %v1727_v12 }
 0x725   : > { %936 = vmatprep.subr.bf16.mxu1 %v1730_v13 }
 0x728   : > { %937 = vmatpush1.bf16.msra.mxu1 %v1733_v14 }
 0x729   : > { %938 = vmatprep.subr.bf16.mxu1 %v1736_v15 }
 0x72c   : > { %939 = vmatpush1.bf16.msra.mxu1 %v1739_v18 }
 0x72d   : > { %940 = vmatprep.subr.bf16.mxu1 %v1742_v19 }
 0x730   : > { %941 = vmatpush1.bf16.msra.mxu1 %v1745_v20  ;;  %v1150_v20 = vld [vmem:[%s1693_s30 + $0x80] sm:$0xff] }
 0x731   : > { %942 = vmatprep.subr.bf16.mxu1 %v1748_v21  ;;  %v1151_v21 = vld [vmem:[%s1693_s30 + $0x88] sm:$0xff] }
 0x734   : > { %943 = vmatpush1.bf16.msra.mxu1 %v1751_v22 }
 0x735   : > { %944 = vmatprep.subr.bf16.mxu1 %v1754_v23 }
 0x738   : > { %945 = vmatpush1.bf16.msra.mxu1 %v1757_v24 }
 0x739   : > { %946 = vmatprep.subr.bf16.mxu1 %v1760_v25 }
 0x73c   : > { %947 = vmatpush1.bf16.msra.mxu1 %v1763_v26 }
 0x73d   : > { %948 = vmatprep.subr.bf16.mxu1 %v1766_v27 }
 0x740   : > { %949 = vmatpush1.bf16.msra.mxu1 %v1769_v28 }
 0x741   : > { %950 = vmatprep.subr.bf16.mxu1 %v1772_v29 }
 0x744   : > { %951 = vmatpush1.bf16.msra.mxu1 %v1775_v30 }
 0x745   : > { %952 = vmatprep.subr.bf16.mxu1 %v1778_v31 }
 0x748   : > { %953 = vmatpush1.bf16.msra.mxu1 %v1781_v32 }
 0x749   : > { %954 = vmatprep.subr.bf16.mxu1 %v1784_v33 }
 0x74c   : > { %955 = vmatpush1.bf16.msra.mxu1 %v1787_v34  ;;  %v1152_v34 = vld [vmem:[%s1693_s30 + $0x90] sm:$0xff] }
 0x74d   : > { %956 = vmatprep.subr.bf16.mxu1 %v1790_v35  ;;  %v1153_v35 = vld [vmem:[%s1693_s30 + $0x98] sm:$0xff] }
 0x750   : > { %957 = vmatpush1.bf16.msra.mxu1 %v1793_v36 }
 0x7e6   : > { %v860_v6 = vpop.f32.mrb[12].mxu1 }
 0x7e7   : > { %v861_v7 = vadd.f32 %v1148_v4, %v860_v6  ;;  %v862_v8 = vpop.f32.mrb[13].mxu1 }
 0x7e8   : > { %v863_v9 = vadd.f32 %v1149_v5, %v862_v8  ;;  %v864_v10 = vpop.f32.mrb[14].mxu1 }
 0x7e9   : > { %v867_v11 = vmax.f32 %v861_v7, -1.0  ;;  %v865_v12 = vpop.f32.mrb[15].mxu1 }
 0x7ea   : > { %v868_v13 = vmax.f32 %v863_v9, -1.0 }
 0x7eb   : > { %v869_v14 = vmin.f32 %v867_v11, 2.0 }
 0x7ec   : > { %v870_v15 = vmin.f32 %v868_v13, 2.0 }
 0x7ed   : > { %v874_v19 = vpack.c.bf16 %v869_v14, %v869_v14 }
 0x7ee   : > { %v875_v18 = vpack.c.bf16 %v870_v15, %v870_v15 }
 0x7f0   : > { %908 = vmatprep.mubr.bf16.mxu0 %v875_v18 }
 0x7f1   : > { %909 = vmatmul.mubr.bf16.vlgmr.msra.gmra.mrb[16].mxu0 %v874_v19 }
 0x8c4   : > { %v910_v22 = vpop.f32.mrb[16].mxu0 }
 0x8c5   : > { %v911_v23 = vadd.f32 %v1150_v20, %v910_v22  ;;  %v912_v24 = vpop.f32.mrb[17].mxu0 }
 0x8c6   : > { %v913_v25 = vadd.f32 %v1151_v21, %v912_v24  ;;  %v914_v26 = vpop.f32.mrb[18].mxu0 }
 0x8c7   : > { %v917_v27 = vmax.f32 %v911_v23, -1.0  ;;  %v915_v28 = vpop.f32.mrb[19].mxu0 }
 0x8c8   : > { %v918_v29 = vmax.f32 %v913_v25, -1.0 }
 0x8c9   : > { %v919_v30 = vmin.f32 %v917_v27, 2.0 }
 0x8ca   : > { %v920_v31 = vmin.f32 %v918_v29, 2.0 }
 0x8cb   : > { %v924_v33 = vpack.c.bf16 %v919_v30, %v919_v30 }
 0x8cc   : > { %v925_v32 = vpack.c.bf16 %v920_v31, %v920_v31 }
 0x8ce   : > { %958 = vmatprep.mubr.bf16.mxu1 %v925_v32 }
 0x8cf   : > { %959 = vmatmul.mubr.bf16.vlgmr.msra.gmra.mrb[16].mxu1 %v924_v33 }
 0x9a2   : > { %v960_v36 = vpop.f32.mrb[16].mxu1 }
 0x9a3   : > { %v961_v59 = vadd.f32 %v1152_v34, %v960_v36  ;;  %v962_v60 = vpop.f32.mrb[17].mxu1 }
 0x9a4   : > { %v963_v61 = vadd.f32 %v1153_v35, %v962_v60  ;;  %v964_v62 = vpop.f32.mrb[18].mxu1  ;;  %976 = sbr.rel (%p1154_p11) target bundleno = 2493 (0x9bd), region = 56 }
 0x9a5   : > { %v967_v63 = vmax.f32 %v961_v59, -1.0  ;;  %v965_v0 = vpop.f32.mrb[19].mxu1 }
 0x9a6   : > { %v968_v1 = vmax.f32 %v963_v61, -1.0 }
 0x9a7   : > { %v969_v2 = vmin.f32 %v967_v63, 2.0 }
 0x9a8   : > { %v970_v16 = vmin.f32 %v968_v1, 2.0 }
 0x9a9   : > { %971 = vst [vmem:[#allocation2] sm:$0xff] %v969_v2 }
 0x9aa   : > { %972 = vst [vmem:[#allocation2 + $0x8] sm:$0xff] %v970_v16 }
 0x9ab   : > { %s2198_s28 = smov (!%p983_p12, %s1155_s28), 1 }
 0x9ac   : > { %s985_s10 = scvt.s32.f32 %s2198_s28 }
 0x9ae   : > { %v988_v38 = vstv %s985_s10 }
 0x9af   : > { %1299 = vrcp.f32 %v988_v38 }
 0x9b9   : > { %v1300_v41 = vpop.eup %1299 }
 0x9ba   : > { %v990_v42 = vmul.f32 %v1300_v41, %v986_v39  ;;  %v991_v43 = vmul.f32 %v1300_v41, %v987_v40 }
 0x9bc   : > { %992 = vst [vmem:[#allocation13] sm:$0xff] %v990_v42  ;;  %993 = vst [vmem:[#allocation13 + $0x8] sm:$0xff] %v991_v43 }
 0x9bd PF: > { %p1203_p13 = scmp.eq.s32.totalorder %s1546_s19, 9  ;;  %s1500_s11 = smov [#allocation12]  }
 0x9be   : > { %s1001_s12 = sshll.u32 %s1500_s11, 4  ;;  %s1501_s13 = smov [#allocation13]   ;;  %s1002_s12 = int_to_ptr.vmem [resolvable:$true] %s1001_s12 }
 0x9bf   : > { %s1012_s14 = sshll.u32 %s1501_s13, 4  ;;  %s1387_s15 = scalar_lea.vmem %s1002_s12, 256  ;;  %s1013_s14 = int_to_ptr.vmem [resolvable:$true] %s1012_s14 }
 0x9c0   : > { %p1388_p5 = scmp.ne.s32.totalorder %s1002_s12, %s1387_s15  ;;  %p1394_p1 = scmp.lt.s32.totalorder %s1002_s12, %s1002_s12 }
 0x9c1   : > { %p1395_p8 = scmp.lt.s32.totalorder %s1387_s15, %s1387_s15 }
 0x9c2   : > { %p1389_p9 = pnand %p1388_p5, %p1203_p13 }
 0x9c3   : > { %p1396_p0 = por %p1395_p8, %p1394_p1 }
 0x9c4   : > { %p1390_p10 = pneg %p1389_p9 }
 0x9c6   : > { %p1397_p3 = pnand %p1396_p0, %p1390_p10 }
 0x9c8   : > { %1400 = shalt.err (!%p1397_p3)
}
 0x9c9   : > { %s1401_s6 = scalar_lea.hbm %s2174_s3, 256 }
 0x9ca   : > { %p1402_p6 = scmp.ne.s32.totalorder %s2174_s3, %s1401_s6  ;;  %p1407_p7 = scmp.lt.u32.totalorder %s1401_s6, %s2174_s3 }
 0x9cc   : > { %p1403_p2 = pnand %p1402_p6, %p1203_p13 }
 0x9ce   : > { %p1404_p4 = pneg %p1403_p2 }
 0x9d0   : > { %p1409_p11 = pnand %p1407_p7, %p1404_p4 }
 0x9d2   : > { %1412 = shalt.err (!%p1409_p11)
}
 0x9d3   : > { %1180 = dma.vmem_to_hbm [thread:$0]  (%p1203_p13), %s1002_s12, 256, %s2174_s3, [#allocation8]  }
 0x9d4   : > { %s1413_s8 = scalar_lea.vmem %s1013_s14, 256  ;;  %p1420_p10 = scmp.lt.s32.totalorder %s1013_s14, %s1013_s14 }
 0x9d5   : > { %p1414_p12 = scmp.ne.s32.totalorder %s1013_s14, %s1413_s8  ;;  %p1421_p1 = scmp.lt.s32.totalorder %s1413_s8, %s1413_s8 }
 0x9d7   : > { %p1415_p5 = pnand %p1414_p12, %p1203_p13  ;;  %p1422_p8 = por %p1421_p1, %p1420_p10 }
 0x9d9   : > { %p1416_p9 = pneg %p1415_p5 }
 0x9db   : > { %p1423_p0 = pnand %p1422_p8, %p1416_p9 }
 0x9dd   : > { %1426 = shalt.err (!%p1423_p0)
}
 0x9de   : > { %s1427_s18 = scalar_lea.hbm %s2175_s4, 256 }
 0x9df   : > { %p1428_p3 = scmp.ne.s32.totalorder %s2175_s4, %s1427_s18  ;;  %p1433_p4 = scmp.lt.u32.totalorder %s1427_s18, %s2175_s4 }
 0x9e1   : > { %p1429_p6 = pnand %p1428_p3, %p1203_p13 }
 0x9e3   : > { %p1430_p2 = pneg %p1429_p6 }
 0x9e5   : > { %p1435_p7 = pnand %p1433_p4, %p1430_p2 }
 0x9e7   : > { %1438 = shalt.err (!%p1435_p7)
}
 0x9e8   : > { %1182 = dma.vmem_to_hbm [thread:$0]  (%p1203_p13), %s1013_s14, 256, %s2175_s4, [#allocation14]  }
 0x9e9   : > { %1468 = dma.done.wait (%p1203_p13), [#allocation8], 256  }
 0x9ea   : > { %1470 = vsyncadd (%p1203_p13), [#allocation8], 4294967040 }
 0x9eb   : > { %1472 = dma.done.wait (%p1203_p13), [#allocation14], 256  }
 0x9ec   : > { %1474 = vsyncadd (%p1203_p13), [#allocation14], 4294967040 }
 0x9ed PF: > { %p16_p11 = scmp.ge.s32.totalorder %s1549_s20, 12   ;;  %s2193_s15 = smov %s1481_s16 }
 0x9ee   : > { %s2194_s16 = smov %s1485_s17  ;;  %s2195_s17 = smov %s1559_s23 }
 0x9ef   : > { %s2196_s18 = smov %s1549_s20  ;;  %18 = sbr.rel (!%p16_p11) target bundleno = 5 (0x5), region = 107 }
 0x9f6   :  { %1029 = vsyncpa [#allocation7], 1 }
 0x9f7   :  { %1031 = vsyncpa [#allocation7 + $0x1], 1 }
 0x9f8   :  { %1032 = vsyncpa [#allocation10], 1 }
 0x9f9   :  { %1033 = vsyncpa [#allocation8], 1 }
 0x9fa   :  { %1035 = vsyncpa [#allocation8 + $0x1], 1 }
 0x9fb   :  { %1036 = vsyncpa [#allocation14], 1 }

</bundles_post_ra>
